<compile_context>
chip_gen: v7x
topology: tpu7x:2x2x1
jax: 0.10.0
libtpu: 0.0.40
codegen_flags: <defaults>
</compile_context>

<pallas_src>
import numpy as np

import jax
import jax.numpy as jnp
from jax import lax
from jax.experimental import pallas as pl
from jax.experimental.pallas import tpu as pltpu


def _make_resblock_kernel(H, W, Cp, B_N, mxu_dtype):
    HW = H * W
    NHW = B_N * HW
    EPS = 1e-5
    INV_HW = 1.0 / float(HW)

    # Static tap offsets for a 3x3 / stride-1 / pad-1 conv (PyTorch cross-corr):
    #   out[y, x] += w[:, :, ky, kx] * in[:, y + ky - 1, x + kx - 1]
    # On the flattened spatial axis the tap offset is (ky-1)*W + (kx-1).
    OFFS = [(ky - 1) * W + (kx - 1) for ky in range(3) for kx in range(3)]

    def kernel(x_ref, m_ref, w1_ref, b1_ref, w2_ref, b2_ref, out_ref, patch_ref):
        # x_ref    : (Cp, NHW)     f32, B_N samples side-by-side on the lane axis
        # m_ref    : (9, Cp, NHW)  f32 zero-padding masks (constant across grid)
        # w*_ref   : (Cp, 9*Cp)    mxu_dtype im2col weight slab
        # b*_ref   : (Cp, 1)       f32
        # out_ref  : (Cp, NHW)     f32
        # patch_ref: (9*Cp, NHW)   mxu_dtype im2col scratch, reused by both convs
        x = x_ref[...]

        def conv3x3(v, w_ref, b_ref):
            # Each tap = lane-axis roll (XLU slot, no slice/reshape copies)
            # * precomputed zero-pad mask; masks guarantee rolled values never
            # leak across row / image / sample boundaries.
            for k, off in enumerate(OFFS):
                tap = v if off == 0 else pltpu.roll(v, shift=(-off) % NHW, axis=1)
                if off != 0:
                    tap = tap * m_ref[k]
                # Cp is a multiple of the sublane-tile height for mxu_dtype,
                # so every store below is a full, aligned vst.
                patch_ref[k * Cp:(k + 1) * Cp, :] = tap.astype(mxu_dtype)
            # One MXU matmul per conv: (Cp, 9Cp) @ (9Cp, B_N*HW), f32 accumulate.
            y = jnp.dot(w_ref[...], patch_ref[...],
                        preferred_element_type=jnp.float32)
            return y + b_ref[...]                          # (Cp, 1) lane-broadcast

        def instance_norm(y):
            # Per-sample stats over each contiguous (lane-tile aligned) HW block.
            # Single pass, biased variance, no affine -> nn.InstanceNorm2d
            # defaults; all statistics math in f32.
            cols = []
            for b in range(B_N):
                yb = y[:, b * HW:(b + 1) * HW]
                s1 = jnp.sum(yb, axis=1, keepdims=True)
                s2 = jnp.sum(yb * yb, axis=1, keepdims=True)
                mean = s1 * INV_HW
                var = s2 * INV_HW - mean * mean
                cols.append((yb - mean) * lax.rsqrt(var + EPS))
            return cols[0] if B_N == 1 else jnp.concatenate(cols, axis=1)

        y1 = jnp.maximum(instance_norm(conv3x3(x, w1_ref, b1_ref)), 0.0)
        y2 = instance_norm(conv3x3(y1, w2_ref, b2_ref))
        out_ref[...] = jnp.maximum(y2 + x, 0.0).astype(out_ref.dtype)

    return kernel


def _pick_samples_per_step(N, HW, lane_target=2048):
    """Largest divisor of N that widens the per-step lane extent (the MXU N dim)
    up to `lane_target`, while keeping >= 2 grid steps whenever N >= 4 so that
    v7x's two TensorCores both get work."""
    best = 1
    for d in range(1, N + 1):
        if N % d != 0:
            continue
        if d > 1 and d * HW > lane_target:
            continue
        if N >= 4 and N // d < 2:
            continue
        best = d
    return best


def residual_block_pallas(x_nchw, w1, b1, w2, b2, *,
                          mxu_dtype=jnp.bfloat16, samples_per_step=None):
    """x_nchw: (N, C, H, W); w*: (C, C, 3, 3); b*: (C,).  Returns (N, C, H, W) f32.

    mxu_dtype: dtype of the MXU operands (im2col patch + weight slabs).
      bf16 (default) targets the bf16-native MXUs of v5e/v6e/v7x; accumulation
      and all normalization math stay f32.  Pass jnp.float32 for bit-faithful
      f32 matmuls.
    """
    N, C, H, W = x_nchw.shape
    HW = H * W
    mxu_dtype = np.dtype(mxu_dtype)

    # Channel padding to the sublane-tile height of the MXU operand dtype
    # (f32: 8 rows, bf16: 16 rows) -> aligned, full patch stores.
    c_align = 8 * (4 // mxu_dtype.itemsize)
    Cp = ((C + c_align - 1) // c_align) * c_align

    if samples_per_step is None:
        samples_per_step = _pick_samples_per_step(N, HW)
    B_N = samples_per_step
    assert N % B_N == 0
    G = N // B_N
    NHW = B_N * HW

    # ---- input slab (G, Cp, B_N*HW): channels on sublanes, samples
    # concatenated on the lane axis.  Pure layout plumbing, done once in HBM.
    x_flat = x_nchw.reshape(N, C, HW).astype(jnp.float32)
    if Cp != C:
        x_flat = jnp.pad(x_flat, ((0, 0), (0, Cp - C), (0, 0)))
    x_slab = (x_flat.reshape(G, B_N, Cp, HW)
              .transpose(0, 2, 1, 3)
              .reshape(G, Cp, NHW))

    # ---- im2col weight slabs: slab[c_out, k*Cp + c_in] = w[c_out, c_in, ky, kx],
    # k = ky*3 + kx, zero-padded to Cp on both channel axes.
    def make_slab(w):
        w_p = jnp.zeros((Cp, Cp, 3, 3), jnp.float32).at[:C, :C].set(
            w.astype(jnp.float32))
        return jnp.transpose(w_p, (0, 2, 3, 1)).reshape(Cp, 9 * Cp).astype(mxu_dtype)

    w1_slab = make_slab(w1)
    w2_slab = make_slab(w2)
    b1_col = jnp.zeros((Cp, 1), jnp.float32).at[:C, 0].set(b1.astype(jnp.float32))
    b2_col = jnp.zeros((Cp, 1), jnp.float32).at[:C, 0].set(b2.astype(jnp.float32))

    # ---- zero-padding boundary masks, precomputed once on the host and
    # pre-broadcast to (9, Cp, NHW) so the kernel does no iota / div / compare /
    # broadcast work per step.  (For very large C*HW, pass (9, NHW) and
    # broadcast once in-kernel instead.)
    g_idx = np.arange(NHW)
    j = g_idx % HW
    yy = j // W
    xx = j % W
    masks = np.zeros((9, NHW), np.float32)
    for k in range(9):
        dy, dx = k // 3 - 1, k % 3 - 1
        valid = (yy + dy >= 0) & (yy + dy < H) & (xx + dx >= 0) & (xx + dx < W)
        masks[k] = valid.astype(np.float32)
    masks_b = jnp.asarray(
        np.ascontiguousarray(np.broadcast_to(masks[:, None, :], (9, Cp, NHW))))

    # ---- VMEM budget: actual block/scratch footprint + headroom (v7x only has
    # 64 MiB physical VMEM, so don't blanket-request 32 MiB).
    wbytes = mxu_dtype.itemsize
    need = (2 * Cp * NHW * 4                  # x block (double-buffered)
            + 2 * Cp * NHW * 4                # out block
            + 2 * 9 * Cp * NHW * 4            # mask block
            + 2 * 2 * Cp * 9 * Cp * wbytes    # two weight slabs
            + 2 * 2 * Cp * 128 * 4            # biases (lane-padded)
            + 9 * Cp * NHW * wbytes)          # patch scratch
    vmem_limit = int(min(64 * 1024 * 1024, 2 * need + (8 << 20)))

    out_slab = pl.pallas_call(
        _make_resblock_kernel(H, W, Cp, B_N, mxu_dtype),
        out_shape=jax.ShapeDtypeStruct((G, Cp, NHW), jnp.float32),
        grid_spec=pltpu.PrefetchScalarGridSpec(
            num_scalar_prefetch=0,
            grid=(G,),
            in_specs=[
                pl.BlockSpec((None, Cp, NHW), lambda g: (g, 0, 0)),
                pl.BlockSpec((9, Cp, NHW), lambda g: (0, 0, 0)),
                pl.BlockSpec((Cp, 9 * Cp), lambda g: (0, 0)),
                pl.BlockSpec((Cp, 1), lambda g: (0, 0)),
                pl.BlockSpec((Cp, 9 * Cp), lambda g: (0, 0)),
                pl.BlockSpec((Cp, 1), lambda g: (0, 0)),
            ],
            out_specs=pl.BlockSpec((None, Cp, NHW), lambda g: (g, 0, 0)),
            scratch_shapes=[pltpu.VMEM((9 * Cp, NHW), mxu_dtype)],
        ),
        compiler_params=pltpu.CompilerParams(
            # Grid steps are independent -> shard across both TCs on v7x.
            dimension_semantics=("parallel",),
            vmem_limit_bytes=vmem_limit,
        ),
    )(x_slab, masks_b, w1_slab, b1_col, w2_slab, b2_col)

    out = (out_slab.reshape(G, Cp, B_N, HW)
           .transpose(0, 2, 1, 3)
           .reshape(N, Cp, HW)[:, :C, :]
           .reshape(N, C, H, W))
    return out


def _reference(x_nchw, w1, b1, w2, b2):
    """Pure-JAX f32 reference for correctness checking."""
    eps = 1e-5
    x = jnp.transpose(x_nchw, (0, 2, 3, 1))

    def conv(x, w, b):
        k = jnp.transpose(w, (2, 3, 1, 0))  # HWIO
        y = lax.conv_general_dilated(x, k, (1, 1), "SAME",
                                     dimension_numbers=("NHWC", "HWIO", "NHWC"))
        return y + b[None, None, None, :]

    def inorm(y):
        mean = jnp.mean(y, axis=(1, 2), keepdims=True)
        var = jnp.mean((y - mean) ** 2, axis=(1, 2), keepdims=True)
        return (y - mean) * lax.rsqrt(var + eps)

    h = jnp.maximum(inorm(conv(x, w1, b1)), 0.0)
    h = inorm(conv(h, w2, b2))
    out = jnp.maximum(h + x, 0.0)
    return jnp.transpose(out, (0, 3, 1, 2))


if __name__ == "__main__":
    N, C, H, W = 2, 4, 16, 16

    key = jax.random.PRNGKey(0)
    kx, kw1, kb1, kw2, kb2 = jax.random.split(key, 5)

    x = jax.random.normal(kx, (N, C, H, W), dtype=jnp.float32)
    # deterministic synthetic parameters (shapes match nn.Conv2d(C, C, 3, padding=1))
    w1 = 0.1 * jax.random.normal(kw1, (C, C, 3, 3), dtype=jnp.float32)
    b1 = 0.1 * jax.random.normal(kb1, (C,), dtype=jnp.float32)
    w2 = 0.1 * jax.random.normal(kw2, (C, C, 3, 3), dtype=jnp.float32)
    b2 = 0.1 * jax.random.normal(kb2, (C,), dtype=jnp.float32)

    ref = jax.block_until_ready(_reference(x, w1, b1, w2, b2))

    # Production path: bf16 MXU operands (f32 accumulate + f32 norm math).
    # bf16 operands shift the result slightly vs. the f32 reference, so the
    # tolerance is loosened accordingly.
    out = jax.block_until_ready(residual_block_pallas(x, w1, b1, w2, b2))
    assert out.shape == (N, C, H, W)
    assert jnp.allclose(out, ref, atol=7.5e-2, rtol=5e-2), "bf16 path mismatch"

    # Exact-algorithm check: f32 MXU operands, tight tolerance vs. f32 reference.
    out_f32 = jax.block_until_ready(
        residual_block_pallas(x, w1, b1, w2, b2, mxu_dtype=jnp.float32))
    assert jnp.allclose(out_f32, ref, atol=1e-4, rtol=1e-4), "f32 path mismatch"

    print("KERNEL_OK")
</pallas_src>

<mosaic_0001>
module attributes {stable_mosaic.version = 11 : i64} {
  func.func @kernel(%arg0: i32, %arg1: memref<1x16x512xf32, #tpu.memory_space<vmem>>, %arg2: memref<9x16x512xf32, #tpu.memory_space<vmem>>, %arg3: memref<16x144xbf16, #tpu.memory_space<vmem>>, %arg4: memref<16x1xf32, #tpu.memory_space<vmem>>, %arg5: memref<16x144xbf16, #tpu.memory_space<vmem>>, %arg6: memref<16x1xf32, #tpu.memory_space<vmem>>, %arg7: memref<1x16x512xf32, #tpu.memory_space<vmem>>, %arg8: memref<144x512xbf16, #tpu.memory_space<vmem>>) attributes {dimension_semantics = [#tpu.dimension_semantics<parallel>], iteration_bounds = array<i64: 1>, scalar_prefetch = 0 : i64, scratch_operands = 1 : i64, tpu.core_type = #tpu.core_type<tc>, window_params = [{transform_indices = @transform_0, window_bounds = array<i64: 1, 16, 512>}, {pipeline_mode = #tpu.pipeline_mode<synchronous>, transform_indices = @transform_1, window_bounds = array<i64: 9, 16, 512>}, {pipeline_mode = #tpu.pipeline_mode<synchronous>, transform_indices = @transform_2, window_bounds = array<i64: 16, 144>}, {pipeline_mode = #tpu.pipeline_mode<synchronous>, transform_indices = @transform_3, window_bounds = array<i64: 16, 1>}, {pipeline_mode = #tpu.pipeline_mode<synchronous>, transform_indices = @transform_4, window_bounds = array<i64: 16, 144>}, {pipeline_mode = #tpu.pipeline_mode<synchronous>, transform_indices = @transform_5, window_bounds = array<i64: 16, 1>}, {transform_indices = @transform_6, window_bounds = array<i64: 1, 16, 512>}]} {
    %c0 = arith.constant 0 : index
    %c0_0 = arith.constant 0 : index
    %c0_1 = arith.constant 0 : index
    %0 = vector.load %arg1[%c0, %c0_0, %c0_1] : memref<1x16x512xf32, #tpu.memory_space<vmem>>, vector<1x16x512xf32>
    %1 = vector.shape_cast %0 : vector<1x16x512xf32> to vector<16x512xf32>
    %c17_i32 = arith.constant 17 : i32
    %2 = tpu.dynamic_rotate %1 by %c17_i32 dim 1 : vector<16x512xf32>, i32 -> vector<16x512xf32>
    %c0_2 = arith.constant 0 : index
    %c0_3 = arith.constant 0 : index
    %c0_4 = arith.constant 0 : index
    %3 = vector.load %arg2[%c0_2, %c0_3, %c0_4] : memref<9x16x512xf32, #tpu.memory_space<vmem>>, vector<1x16x512xf32>
    %4 = vector.shape_cast %3 : vector<1x16x512xf32> to vector<16x512xf32>
    %5 = arith.mulf %2, %4 : vector<16x512xf32>
    %6 = arith.truncf %5 : vector<16x512xf32> to vector<16x512xbf16>
    %c0_5 = arith.constant 0 : index
    %c0_6 = arith.constant 0 : index
    %7 = vector.load %arg8[%c0_5, %c0_6] : memref<144x512xbf16, #tpu.memory_space<vmem>>, vector<16x512xbf16>
    tpu.vector_store %arg8[%c0_5, %c0_6], %6 {strides = array<i32>} : memref<144x512xbf16, #tpu.memory_space<vmem>>, vector<16x512xbf16>,
    %c16_i32 = arith.constant 16 : i32
    %8 = tpu.dynamic_rotate %1 by %c16_i32 dim 1 : vector<16x512xf32>, i32 -> vector<16x512xf32>
    %c1 = arith.constant 1 : index
    %c0_7 = arith.constant 0 : index
    %c0_8 = arith.constant 0 : index
    %9 = vector.load %arg2[%c1, %c0_7, %c0_8] : memref<9x16x512xf32, #tpu.memory_space<vmem>>, vector<1x16x512xf32>
    %10 = vector.shape_cast %9 : vector<1x16x512xf32> to vector<16x512xf32>
    %11 = arith.mulf %8, %10 : vector<16x512xf32>
    %12 = arith.truncf %11 : vector<16x512xf32> to vector<16x512xbf16>
    %c16 = arith.constant 16 : index
    %c0_9 = arith.constant 0 : index
    %13 = vector.load %arg8[%c16, %c0_9] : memref<144x512xbf16, #tpu.memory_space<vmem>>, vector<16x512xbf16>
    tpu.vector_store %arg8[%c16, %c0_9], %12 {strides = array<i32>} : memref<144x512xbf16, #tpu.memory_space<vmem>>, vector<16x512xbf16>,
    %c15_i32 = arith.constant 15 : i32
    %14 = tpu.dynamic_rotate %1 by %c15_i32 dim 1 : vector<16x512xf32>, i32 -> vector<16x512xf32>
    %c2 = arith.constant 2 : index
    %c0_10 = arith.constant 0 : index
    %c0_11 = arith.constant 0 : index
    %15 = vector.load %arg2[%c2, %c0_10, %c0_11] : memref<9x16x512xf32, #tpu.memory_space<vmem>>, vector<1x16x512xf32>
    %16 = vector.shape_cast %15 : vector<1x16x512xf32> to vector<16x512xf32>
    %17 = arith.mulf %14, %16 : vector<16x512xf32>
    %18 = arith.truncf %17 : vector<16x512xf32> to vector<16x512xbf16>
    %c32 = arith.constant 32 : index
    %c0_12 = arith.constant 0 : index
    %19 = vector.load %arg8[%c32, %c0_12] : memref<144x512xbf16, #tpu.memory_space<vmem>>, vector<16x512xbf16>
    tpu.vector_store %arg8[%c32, %c0_12], %18 {strides = array<i32>} : memref<144x512xbf16, #tpu.memory_space<vmem>>, vector<16x512xbf16>,
    %c1_i32 = arith.constant 1 : i32
    %20 = tpu.dynamic_rotate %1 by %c1_i32 dim 1 : vector<16x512xf32>, i32 -> vector<16x512xf32>
    %c3 = arith.constant 3 : index
    %c0_13 = arith.constant 0 : index
    %c0_14 = arith.constant 0 : index
    %21 = vector.load %arg2[%c3, %c0_13, %c0_14] : memref<9x16x512xf32, #tpu.memory_space<vmem>>, vector<1x16x512xf32>
    %22 = vector.shape_cast %21 : vector<1x16x512xf32> to vector<16x512xf32>
    %23 = arith.mulf %20, %22 : vector<16x512xf32>
    %24 = arith.truncf %23 : vector<16x512xf32> to vector<16x512xbf16>
    %c48 = arith.constant 48 : index
    %c0_15 = arith.constant 0 : index
    %25 = vector.load %arg8[%c48, %c0_15] : memref<144x512xbf16, #tpu.memory_space<vmem>>, vector<16x512xbf16>
    tpu.vector_store %arg8[%c48, %c0_15], %24 {strides = array<i32>} : memref<144x512xbf16, #tpu.memory_space<vmem>>, vector<16x512xbf16>,
    %26 = arith.truncf %1 : vector<16x512xf32> to vector<16x512xbf16>
    %c64 = arith.constant 64 : index
    %c0_16 = arith.constant 0 : index
    %27 = vector.load %arg8[%c64, %c0_16] : memref<144x512xbf16, #tpu.memory_space<vmem>>, vector<16x512xbf16>
    tpu.vector_store %arg8[%c64, %c0_16], %26 {strides = array<i32>} : memref<144x512xbf16, #tpu.memory_space<vmem>>, vector<16x512xbf16>,
    %c511_i32 = arith.constant 511 : i32
    %28 = tpu.dynamic_rotate %1 by %c511_i32 dim 1 : vector<16x512xf32>, i32 -> vector<16x512xf32>
    %c5 = arith.constant 5 : index
    %c0_17 = arith.constant 0 : index
    %c0_18 = arith.constant 0 : index
    %29 = vector.load %arg2[%c5, %c0_17, %c0_18] : memref<9x16x512xf32, #tpu.memory_space<vmem>>, vector<1x16x512xf32>
    %30 = vector.shape_cast %29 : vector<1x16x512xf32> to vector<16x512xf32>
    %31 = arith.mulf %28, %30 : vector<16x512xf32>
    %32 = arith.truncf %31 : vector<16x512xf32> to vector<16x512xbf16>
    %c80 = arith.constant 80 : index
    %c0_19 = arith.constant 0 : index
    %33 = vector.load %arg8[%c80, %c0_19] : memref<144x512xbf16, #tpu.memory_space<vmem>>, vector<16x512xbf16>
    tpu.vector_store %arg8[%c80, %c0_19], %32 {strides = array<i32>} : memref<144x512xbf16, #tpu.memory_space<vmem>>, vector<16x512xbf16>,
    %c497_i32 = arith.constant 497 : i32
    %34 = tpu.dynamic_rotate %1 by %c497_i32 dim 1 : vector<16x512xf32>, i32 -> vector<16x512xf32>
    %c6 = arith.constant 6 : index
    %c0_20 = arith.constant 0 : index
    %c0_21 = arith.constant 0 : index
    %35 = vector.load %arg2[%c6, %c0_20, %c0_21] : memref<9x16x512xf32, #tpu.memory_space<vmem>>, vector<1x16x512xf32>
    %36 = vector.shape_cast %35 : vector<1x16x512xf32> to vector<16x512xf32>
    %37 = arith.mulf %34, %36 : vector<16x512xf32>
    %38 = arith.truncf %37 : vector<16x512xf32> to vector<16x512xbf16>
    %c96 = arith.constant 96 : index
    %c0_22 = arith.constant 0 : index
    %39 = vector.load %arg8[%c96, %c0_22] : memref<144x512xbf16, #tpu.memory_space<vmem>>, vector<16x512xbf16>
    tpu.vector_store %arg8[%c96, %c0_22], %38 {strides = array<i32>} : memref<144x512xbf16, #tpu.memory_space<vmem>>, vector<16x512xbf16>,
    %c496_i32 = arith.constant 496 : i32
    %40 = tpu.dynamic_rotate %1 by %c496_i32 dim 1 : vector<16x512xf32>, i32 -> vector<16x512xf32>
    %c7 = arith.constant 7 : index
    %c0_23 = arith.constant 0 : index
    %c0_24 = arith.constant 0 : index
    %41 = vector.load %arg2[%c7, %c0_23, %c0_24] : memref<9x16x512xf32, #tpu.memory_space<vmem>>, vector<1x16x512xf32>
    %42 = vector.shape_cast %41 : vector<1x16x512xf32> to vector<16x512xf32>
    %43 = arith.mulf %40, %42 : vector<16x512xf32>
    %44 = arith.truncf %43 : vector<16x512xf32> to vector<16x512xbf16>
    %c112 = arith.constant 112 : index
    %c0_25 = arith.constant 0 : index
    %45 = vector.load %arg8[%c112, %c0_25] : memref<144x512xbf16, #tpu.memory_space<vmem>>, vector<16x512xbf16>
    tpu.vector_store %arg8[%c112, %c0_25], %44 {strides = array<i32>} : memref<144x512xbf16, #tpu.memory_space<vmem>>, vector<16x512xbf16>,
    %c495_i32 = arith.constant 495 : i32
    %46 = tpu.dynamic_rotate %1 by %c495_i32 dim 1 : vector<16x512xf32>, i32 -> vector<16x512xf32>
    %c8 = arith.constant 8 : index
    %c0_26 = arith.constant 0 : index
    %c0_27 = arith.constant 0 : index
    %47 = vector.load %arg2[%c8, %c0_26, %c0_27] : memref<9x16x512xf32, #tpu.memory_space<vmem>>, vector<1x16x512xf32>
    %48 = vector.shape_cast %47 : vector<1x16x512xf32> to vector<16x512xf32>
    %49 = arith.mulf %46, %48 : vector<16x512xf32>
    %50 = arith.truncf %49 : vector<16x512xf32> to vector<16x512xbf16>
    %c128 = arith.constant 128 : index
    %c0_28 = arith.constant 0 : index
    %51 = vector.load %arg8[%c128, %c0_28] : memref<144x512xbf16, #tpu.memory_space<vmem>>, vector<16x512xbf16>
    tpu.vector_store %arg8[%c128, %c0_28], %50 {strides = array<i32>} : memref<144x512xbf16, #tpu.memory_space<vmem>>, vector<16x512xbf16>,
    %c0_29 = arith.constant 0 : index
    %c0_30 = arith.constant 0 : index
    %52 = vector.load %arg3[%c0_29, %c0_30] : memref<16x144xbf16, #tpu.memory_space<vmem>>, vector<16x144xbf16>
    %c0_31 = arith.constant 0 : index
    %c0_32 = arith.constant 0 : index
    %53 = vector.load %arg8[%c0_31, %c0_32] : memref<144x512xbf16, #tpu.memory_space<vmem>>, vector<144x512xbf16>
    %cst = arith.constant dense<0.000000e+00> : vector<16x512xf32>
    %54 = tpu.matmul %52, %53, %cst {dimension_numbers = #tpu.dot_dimension_numbers<[1], [0], [0], [1], [0, 0, 1, 1], [], []>} : vector<16x144xbf16>, vector<144x512xbf16>, vector<16x512xf32> -> vector<16x512xf32>
    %c0_33 = arith.constant 0 : index
    %c0_34 = arith.constant 0 : index
    %55 = vector.load %arg4[%c0_33, %c0_34] : memref<16x1xf32, #tpu.memory_space<vmem>>, vector<16x1xf32>
    %56 = vector.broadcast %55 : vector<16x1xf32> to vector<16x512xf32>
    %57 = arith.addf %54, %56 : vector<16x512xf32>
    %58 = vector.extract_strided_slice %57 {offsets = [0, 0], sizes = [16, 256], strides = [1, 1]} : vector<16x512xf32> to vector<16x256xf32>
    %cst_35 = arith.constant dense<0.000000e+00> : vector<16xf32>
    %59 = vector.multi_reduction <add>, %58, %cst_35 [1] : vector<16x256xf32> to vector<16xf32>
    %60 = vector.shape_cast %59 : vector<16xf32> to vector<16x1xf32>
    %61 = arith.mulf %58, %58 : vector<16x256xf32>
    %cst_36 = arith.constant dense<0.000000e+00> : vector<16xf32>
    %62 = vector.multi_reduction <add>, %61, %cst_36 [1] : vector<16x256xf32> to vector<16xf32>
    %63 = vector.shape_cast %62 : vector<16xf32> to vector<16x1xf32>
    %cst_37 = arith.constant 3.906250e-03 : f32
    %64 = vector.broadcast %cst_37 : f32 to vector<16x1xf32>
    %65 = arith.mulf %60, %64 : vector<16x1xf32>
    %cst_38 = arith.constant 3.906250e-03 : f32
    %66 = vector.broadcast %cst_38 : f32 to vector<16x1xf32>
    %67 = arith.mulf %63, %66 : vector<16x1xf32>
    %68 = arith.mulf %65, %65 : vector<16x1xf32>
    %69 = arith.subf %67, %68 : vector<16x1xf32>
    %70 = vector.broadcast %65 : vector<16x1xf32> to vector<16x256xf32>
    %71 = arith.subf %58, %70 : vector<16x256xf32>
    %cst_39 = arith.constant 9.99999974E-6 : f32
    %72 = vector.broadcast %cst_39 : f32 to vector<16x1xf32>
    %73 = arith.addf %69, %72 : vector<16x1xf32>
    %74 = math.rsqrt %73 : vector<16x1xf32>
    %75 = vector.broadcast %74 : vector<16x1xf32> to vector<16x256xf32>
    %76 = arith.mulf %71, %75 : vector<16x256xf32>
    %77 = vector.extract_strided_slice %57 {offsets = [0, 256], sizes = [16, 256], strides = [1, 1]} : vector<16x512xf32> to vector<16x256xf32>
    %cst_40 = arith.constant dense<0.000000e+00> : vector<16xf32>
    %78 = vector.multi_reduction <add>, %77, %cst_40 [1] : vector<16x256xf32> to vector<16xf32>
    %79 = vector.shape_cast %78 : vector<16xf32> to vector<16x1xf32>
    %80 = arith.mulf %77, %77 : vector<16x256xf32>
    %cst_41 = arith.constant dense<0.000000e+00> : vector<16xf32>
    %81 = vector.multi_reduction <add>, %80, %cst_41 [1] : vector<16x256xf32> to vector<16xf32>
    %82 = vector.shape_cast %81 : vector<16xf32> to vector<16x1xf32>
    %cst_42 = arith.constant 3.906250e-03 : f32
    %83 = vector.broadcast %cst_42 : f32 to vector<16x1xf32>
    %84 = arith.mulf %79, %83 : vector<16x1xf32>
    %cst_43 = arith.constant 3.906250e-03 : f32
    %85 = vector.broadcast %cst_43 : f32 to vector<16x1xf32>
    %86 = arith.mulf %82, %85 : vector<16x1xf32>
    %87 = arith.mulf %84, %84 : vector<16x1xf32>
    %88 = arith.subf %86, %87 : vector<16x1xf32>
    %89 = vector.broadcast %84 : vector<16x1xf32> to vector<16x256xf32>
    %90 = arith.subf %77, %89 : vector<16x256xf32>
    %cst_44 = arith.constant 9.99999974E-6 : f32
    %91 = vector.broadcast %cst_44 : f32 to vector<16x1xf32>
    %92 = arith.addf %88, %91 : vector<16x1xf32>
    %93 = math.rsqrt %92 : vector<16x1xf32>
    %94 = vector.broadcast %93 : vector<16x1xf32> to vector<16x256xf32>
    %95 = arith.mulf %90, %94 : vector<16x256xf32>
    %96 = tpu.concatenate %76, %95 in 1 : vector<16x256xf32>, vector<16x256xf32> -> vector<16x512xf32>
    %cst_45 = arith.constant 0.000000e+00 : f32
    %97 = vector.broadcast %cst_45 : f32 to vector<16x512xf32>
    %98 = arith.maximumf %96, %97 : vector<16x512xf32>
    %c17_i32_46 = arith.constant 17 : i32
    %99 = tpu.dynamic_rotate %98 by %c17_i32_46 dim 1 : vector<16x512xf32>, i32 -> vector<16x512xf32>
    %c0_47 = arith.constant 0 : index
    %c0_48 = arith.constant 0 : index
    %c0_49 = arith.constant 0 : index
    %100 = vector.load %arg2[%c0_47, %c0_48, %c0_49] : memref<9x16x512xf32, #tpu.memory_space<vmem>>, vector<1x16x512xf32>
    %101 = vector.shape_cast %100 : vector<1x16x512xf32> to vector<16x512xf32>
    %102 = arith.mulf %99, %101 : vector<16x512xf32>
    %103 = arith.truncf %102 : vector<16x512xf32> to vector<16x512xbf16>
    %c0_50 = arith.constant 0 : index
    %c0_51 = arith.constant 0 : index
    %104 = vector.load %arg8[%c0_50, %c0_51] : memref<144x512xbf16, #tpu.memory_space<vmem>>, vector<16x512xbf16>
    tpu.vector_store %arg8[%c0_50, %c0_51], %103 {strides = array<i32>} : memref<144x512xbf16, #tpu.memory_space<vmem>>, vector<16x512xbf16>,
    %c16_i32_52 = arith.constant 16 : i32
    %105 = tpu.dynamic_rotate %98 by %c16_i32_52 dim 1 : vector<16x512xf32>, i32 -> vector<16x512xf32>
    %c1_53 = arith.constant 1 : index
    %c0_54 = arith.constant 0 : index
    %c0_55 = arith.constant 0 : index
    %106 = vector.load %arg2[%c1_53, %c0_54, %c0_55] : memref<9x16x512xf32, #tpu.memory_space<vmem>>, vector<1x16x512xf32>
    %107 = vector.shape_cast %106 : vector<1x16x512xf32> to vector<16x512xf32>
    %108 = arith.mulf %105, %107 : vector<16x512xf32>
    %109 = arith.truncf %108 : vector<16x512xf32> to vector<16x512xbf16>
    %c16_56 = arith.constant 16 : index
    %c0_57 = arith.constant 0 : index
    %110 = vector.load %arg8[%c16_56, %c0_57] : memref<144x512xbf16, #tpu.memory_space<vmem>>, vector<16x512xbf16>
    tpu.vector_store %arg8[%c16_56, %c0_57], %109 {strides = array<i32>} : memref<144x512xbf16, #tpu.memory_space<vmem>>, vector<16x512xbf16>,
    %c15_i32_58 = arith.constant 15 : i32
    %111 = tpu.dynamic_rotate %98 by %c15_i32_58 dim 1 : vector<16x512xf32>, i32 -> vector<16x512xf32>
    %c2_59 = arith.constant 2 : index
    %c0_60 = arith.constant 0 : index
    %c0_61 = arith.constant 0 : index
    %112 = vector.load %arg2[%c2_59, %c0_60, %c0_61] : memref<9x16x512xf32, #tpu.memory_space<vmem>>, vector<1x16x512xf32>
    %113 = vector.shape_cast %112 : vector<1x16x512xf32> to vector<16x512xf32>
    %114 = arith.mulf %111, %113 : vector<16x512xf32>
    %115 = arith.truncf %114 : vector<16x512xf32> to vector<16x512xbf16>
    %c32_62 = arith.constant 32 : index
    %c0_63 = arith.constant 0 : index
    %116 = vector.load %arg8[%c32_62, %c0_63] : memref<144x512xbf16, #tpu.memory_space<vmem>>, vector<16x512xbf16>
    tpu.vector_store %arg8[%c32_62, %c0_63], %115 {strides = array<i32>} : memref<144x512xbf16, #tpu.memory_space<vmem>>, vector<16x512xbf16>,
    %c1_i32_64 = arith.constant 1 : i32
    %117 = tpu.dynamic_rotate %98 by %c1_i32_64 dim 1 : vector<16x512xf32>, i32 -> vector<16x512xf32>
    %c3_65 = arith.constant 3 : index
    %c0_66 = arith.constant 0 : index
    %c0_67 = arith.constant 0 : index
    %118 = vector.load %arg2[%c3_65, %c0_66, %c0_67] : memref<9x16x512xf32, #tpu.memory_space<vmem>>, vector<1x16x512xf32>
    %119 = vector.shape_cast %118 : vector<1x16x512xf32> to vector<16x512xf32>
    %120 = arith.mulf %117, %119 : vector<16x512xf32>
    %121 = arith.truncf %120 : vector<16x512xf32> to vector<16x512xbf16>
    %c48_68 = arith.constant 48 : index
    %c0_69 = arith.constant 0 : index
    %122 = vector.load %arg8[%c48_68, %c0_69] : memref<144x512xbf16, #tpu.memory_space<vmem>>, vector<16x512xbf16>
    tpu.vector_store %arg8[%c48_68, %c0_69], %121 {strides = array<i32>} : memref<144x512xbf16, #tpu.memory_space<vmem>>, vector<16x512xbf16>,
    %123 = arith.truncf %98 : vector<16x512xf32> to vector<16x512xbf16>
    %c64_70 = arith.constant 64 : index
    %c0_71 = arith.constant 0 : index
    %124 = vector.load %arg8[%c64_70, %c0_71] : memref<144x512xbf16, #tpu.memory_space<vmem>>, vector<16x512xbf16>
    tpu.vector_store %arg8[%c64_70, %c0_71], %123 {strides = array<i32>} : memref<144x512xbf16, #tpu.memory_space<vmem>>, vector<16x512xbf16>,
    %c511_i32_72 = arith.constant 511 : i32
    %125 = tpu.dynamic_rotate %98 by %c511_i32_72 dim 1 : vector<16x512xf32>, i32 -> vector<16x512xf32>
    %c5_73 = arith.constant 5 : index
    %c0_74 = arith.constant 0 : index
    %c0_75 = arith.constant 0 : index
    %126 = vector.load %arg2[%c5_73, %c0_74, %c0_75] : memref<9x16x512xf32, #tpu.memory_space<vmem>>, vector<1x16x512xf32>
    %127 = vector.shape_cast %126 : vector<1x16x512xf32> to vector<16x512xf32>
    %128 = arith.mulf %125, %127 : vector<16x512xf32>
    %129 = arith.truncf %128 : vector<16x512xf32> to vector<16x512xbf16>
    %c80_76 = arith.constant 80 : index
    %c0_77 = arith.constant 0 : index
    %130 = vector.load %arg8[%c80_76, %c0_77] : memref<144x512xbf16, #tpu.memory_space<vmem>>, vector<16x512xbf16>
    tpu.vector_store %arg8[%c80_76, %c0_77], %129 {strides = array<i32>} : memref<144x512xbf16, #tpu.memory_space<vmem>>, vector<16x512xbf16>,
    %c497_i32_78 = arith.constant 497 : i32
    %131 = tpu.dynamic_rotate %98 by %c497_i32_78 dim 1 : vector<16x512xf32>, i32 -> vector<16x512xf32>
    %c6_79 = arith.constant 6 : index
    %c0_80 = arith.constant 0 : index
    %c0_81 = arith.constant 0 : index
    %132 = vector.load %arg2[%c6_79, %c0_80, %c0_81] : memref<9x16x512xf32, #tpu.memory_space<vmem>>, vector<1x16x512xf32>
    %133 = vector.shape_cast %132 : vector<1x16x512xf32> to vector<16x512xf32>
    %134 = arith.mulf %131, %133 : vector<16x512xf32>
    %135 = arith.truncf %134 : vector<16x512xf32> to vector<16x512xbf16>
    %c96_82 = arith.constant 96 : index
    %c0_83 = arith.constant 0 : index
    %136 = vector.load %arg8[%c96_82, %c0_83] : memref<144x512xbf16, #tpu.memory_space<vmem>>, vector<16x512xbf16>
    tpu.vector_store %arg8[%c96_82, %c0_83], %135 {strides = array<i32>} : memref<144x512xbf16, #tpu.memory_space<vmem>>, vector<16x512xbf16>,
    %c496_i32_84 = arith.constant 496 : i32
    %137 = tpu.dynamic_rotate %98 by %c496_i32_84 dim 1 : vector<16x512xf32>, i32 -> vector<16x512xf32>
    %c7_85 = arith.constant 7 : index
    %c0_86 = arith.constant 0 : index
    %c0_87 = arith.constant 0 : index
    %138 = vector.load %arg2[%c7_85, %c0_86, %c0_87] : memref<9x16x512xf32, #tpu.memory_space<vmem>>, vector<1x16x512xf32>
    %139 = vector.shape_cast %138 : vector<1x16x512xf32> to vector<16x512xf32>
    %140 = arith.mulf %137, %139 : vector<16x512xf32>
    %141 = arith.truncf %140 : vector<16x512xf32> to vector<16x512xbf16>
    %c112_88 = arith.constant 112 : index
    %c0_89 = arith.constant 0 : index
    %142 = vector.load %arg8[%c112_88, %c0_89] : memref<144x512xbf16, #tpu.memory_space<vmem>>, vector<16x512xbf16>
    tpu.vector_store %arg8[%c112_88, %c0_89], %141 {strides = array<i32>} : memref<144x512xbf16, #tpu.memory_space<vmem>>, vector<16x512xbf16>,
    %c495_i32_90 = arith.constant 495 : i32
    %143 = tpu.dynamic_rotate %98 by %c495_i32_90 dim 1 : vector<16x512xf32>, i32 -> vector<16x512xf32>
    %c8_91 = arith.constant 8 : index
    %c0_92 = arith.constant 0 : index
    %c0_93 = arith.constant 0 : index
    %144 = vector.load %arg2[%c8_91, %c0_92, %c0_93] : memref<9x16x512xf32, #tpu.memory_space<vmem>>, vector<1x16x512xf32>
    %145 = vector.shape_cast %144 : vector<1x16x512xf32> to vector<16x512xf32>
    %146 = arith.mulf %143, %145 : vector<16x512xf32>
    %147 = arith.truncf %146 : vector<16x512xf32> to vector<16x512xbf16>
    %c128_94 = arith.constant 128 : index
    %c0_95 = arith.constant 0 : index
    %148 = vector.load %arg8[%c128_94, %c0_95] : memref<144x512xbf16, #tpu.memory_space<vmem>>, vector<16x512xbf16>
    tpu.vector_store %arg8[%c128_94, %c0_95], %147 {strides = array<i32>} : memref<144x512xbf16, #tpu.memory_space<vmem>>, vector<16x512xbf16>,
    %c0_96 = arith.constant 0 : index
    %c0_97 = arith.constant 0 : index
    %149 = vector.load %arg5[%c0_96, %c0_97] : memref<16x144xbf16, #tpu.memory_space<vmem>>, vector<16x144xbf16>
    %c0_98 = arith.constant 0 : index
    %c0_99 = arith.constant 0 : index
    %150 = vector.load %arg8[%c0_98, %c0_99] : memref<144x512xbf16, #tpu.memory_space<vmem>>, vector<144x512xbf16>
    %cst_100 = arith.constant dense<0.000000e+00> : vector<16x512xf32>
    %151 = tpu.matmul %149, %150, %cst_100 {dimension_numbers = #tpu.dot_dimension_numbers<[1], [0], [0], [1], [0, 0, 1, 1], [], []>} : vector<16x144xbf16>, vector<144x512xbf16>, vector<16x512xf32> -> vector<16x512xf32>
    %c0_101 = arith.constant 0 : index
    %c0_102 = arith.constant 0 : index
    %152 = vector.load %arg6[%c0_101, %c0_102] : memref<16x1xf32, #tpu.memory_space<vmem>>, vector<16x1xf32>
    %153 = vector.broadcast %152 : vector<16x1xf32> to vector<16x512xf32>
    %154 = arith.addf %151, %153 : vector<16x512xf32>
    %155 = vector.extract_strided_slice %154 {offsets = [0, 0], sizes = [16, 256], strides = [1, 1]} : vector<16x512xf32> to vector<16x256xf32>
    %cst_103 = arith.constant dense<0.000000e+00> : vector<16xf32>
    %156 = vector.multi_reduction <add>, %155, %cst_103 [1] : vector<16x256xf32> to vector<16xf32>
    %157 = vector.shape_cast %156 : vector<16xf32> to vector<16x1xf32>
    %158 = arith.mulf %155, %155 : vector<16x256xf32>
    %cst_104 = arith.constant dense<0.000000e+00> : vector<16xf32>
    %159 = vector.multi_reduction <add>, %158, %cst_104 [1] : vector<16x256xf32> to vector<16xf32>
    %160 = vector.shape_cast %159 : vector<16xf32> to vector<16x1xf32>
    %cst_105 = arith.constant 3.906250e-03 : f32
    %161 = vector.broadcast %cst_105 : f32 to vector<16x1xf32>
    %162 = arith.mulf %157, %161 : vector<16x1xf32>
    %cst_106 = arith.constant 3.906250e-03 : f32
    %163 = vector.broadcast %cst_106 : f32 to vector<16x1xf32>
    %164 = arith.mulf %160, %163 : vector<16x1xf32>
    %165 = arith.mulf %162, %162 : vector<16x1xf32>
    %166 = arith.subf %164, %165 : vector<16x1xf32>
    %167 = vector.broadcast %162 : vector<16x1xf32> to vector<16x256xf32>
    %168 = arith.subf %155, %167 : vector<16x256xf32>
    %cst_107 = arith.constant 9.99999974E-6 : f32
    %169 = vector.broadcast %cst_107 : f32 to vector<16x1xf32>
    %170 = arith.addf %166, %169 : vector<16x1xf32>
    %171 = math.rsqrt %170 : vector<16x1xf32>
    %172 = vector.broadcast %171 : vector<16x1xf32> to vector<16x256xf32>
    %173 = arith.mulf %168, %172 : vector<16x256xf32>
    %174 = vector.extract_strided_slice %154 {offsets = [0, 256], sizes = [16, 256], strides = [1, 1]} : vector<16x512xf32> to vector<16x256xf32>
    %cst_108 = arith.constant dense<0.000000e+00> : vector<16xf32>
    %175 = vector.multi_reduction <add>, %174, %cst_108 [1] : vector<16x256xf32> to vector<16xf32>
    %176 = vector.shape_cast %175 : vector<16xf32> to vector<16x1xf32>
    %177 = arith.mulf %174, %174 : vector<16x256xf32>
    %cst_109 = arith.constant dense<0.000000e+00> : vector<16xf32>
    %178 = vector.multi_reduction <add>, %177, %cst_109 [1] : vector<16x256xf32> to vector<16xf32>
    %179 = vector.shape_cast %178 : vector<16xf32> to vector<16x1xf32>
    %cst_110 = arith.constant 3.906250e-03 : f32
    %180 = vector.broadcast %cst_110 : f32 to vector<16x1xf32>
    %181 = arith.mulf %176, %180 : vector<16x1xf32>
    %cst_111 = arith.constant 3.906250e-03 : f32
    %182 = vector.broadcast %cst_111 : f32 to vector<16x1xf32>
    %183 = arith.mulf %179, %182 : vector<16x1xf32>
    %184 = arith.mulf %181, %181 : vector<16x1xf32>
    %185 = arith.subf %183, %184 : vector<16x1xf32>
    %186 = vector.broadcast %181 : vector<16x1xf32> to vector<16x256xf32>
    %187 = arith.subf %174, %186 : vector<16x256xf32>
    %cst_112 = arith.constant 9.99999974E-6 : f32
    %188 = vector.broadcast %cst_112 : f32 to vector<16x1xf32>
    %189 = arith.addf %185, %188 : vector<16x1xf32>
    %190 = math.rsqrt %189 : vector<16x1xf32>
    %191 = vector.broadcast %190 : vector<16x1xf32> to vector<16x256xf32>
    %192 = arith.mulf %187, %191 : vector<16x256xf32>
    %193 = tpu.concatenate %173, %192 in 1 : vector<16x256xf32>, vector<16x256xf32> -> vector<16x512xf32>
    %194 = arith.addf %193, %1 : vector<16x512xf32>
    %cst_113 = arith.constant 0.000000e+00 : f32
    %195 = vector.broadcast %cst_113 : f32 to vector<16x512xf32>
    %196 = arith.maximumf %194, %195 : vector<16x512xf32>
    %c0_114 = arith.constant 0 : index
    %c0_115 = arith.constant 0 : index
    %c0_116 = arith.constant 0 : index
    %197 = vector.load %arg7[%c0_114, %c0_115, %c0_116] : memref<1x16x512xf32, #tpu.memory_space<vmem>>, vector<1x16x512xf32>
    %198 = vector.shape_cast %197 : vector<1x16x512xf32> to vector<16x512xf32>
    %199 = vector.shape_cast %196 : vector<16x512xf32> to vector<1x16x512xf32>
    tpu.vector_store %arg7[%c0_114, %c0_115, %c0_116], %199 {strides = array<i32>} : memref<1x16x512xf32, #tpu.memory_space<vmem>>, vector<1x16x512xf32>,
    return
  }
  func.func @transform_0(%arg0: i32) -> (i32, i32, i32) {
    %c0_i32 = arith.constant 0 : i32
    %c0_i32_0 = arith.constant 0 : i32
    %c0_i32_1 = arith.constant 0 : i32
    return %arg0, %c0_i32, %c0_i32_0 : i32, i32, i32
  }
  func.func @transform_1(%arg0: i32) -> (i32, i32, i32) {
    %c0_i32 = arith.constant 0 : i32
    %c0_i32_0 = arith.constant 0 : i32
    %c0_i32_1 = arith.constant 0 : i32
    %c0_i32_2 = arith.constant 0 : i32
    return %c0_i32, %c0_i32_0, %c0_i32_1 : i32, i32, i32
  }
  func.func @transform_2(%arg0: i32) -> (i32, i32) {
    %c0_i32 = arith.constant 0 : i32
    %c0_i32_0 = arith.constant 0 : i32
    %c0_i32_1 = arith.constant 0 : i32
    return %c0_i32, %c0_i32_0 : i32, i32
  }
  func.func @transform_3(%arg0: i32) -> (i32, i32) {
    %c0_i32 = arith.constant 0 : i32
    %c0_i32_0 = arith.constant 0 : i32
    %c0_i32_1 = arith.constant 0 : i32
    return %c0_i32, %c0_i32_0 : i32, i32
  }
  func.func @transform_4(%arg0: i32) -> (i32, i32) {
    %c0_i32 = arith.constant 0 : i32
    %c0_i32_0 = arith.constant 0 : i32
    %c0_i32_1 = arith.constant 0 : i32
    return %c0_i32, %c0_i32_0 : i32, i32
  }
  func.func @transform_5(%arg0: i32) -> (i32, i32) {
    %c0_i32 = arith.constant 0 : i32
    %c0_i32_0 = arith.constant 0 : i32
    %c0_i32_1 = arith.constant 0 : i32
    return %c0_i32, %c0_i32_0 : i32, i32
  }
  func.func @transform_6(%arg0: i32) -> (i32, i32, i32) {
    %c0_i32 = arith.constant 0 : i32
    %c0_i32_0 = arith.constant 0 : i32
    %c0_i32_1 = arith.constant 0 : i32
    return %arg0, %c0_i32, %c0_i32_0 : i32, i32, i32
  }
}

</mosaic_0001>

<bundles_post_ra>
// kernel: tpu_custom_call.1
= control target key start
LH: loop header
LB: loop body
LE: loop exit
PB: predicated region body
PF: predicated region fallthrough
CT: control target
= control target key end

     0   :  { %11 = vsyncpa [#allocation4], 0  ;;  %s2614_s0 = inlined_call_operand.hbm [shape: f32[1,16,512], index: 0, kind: input, shape index: {}]   ;;  %s2615_s1 = inlined_call_operand.hbm [shape: f32[9,16,512], index: 1, kind: input, shape index: {}]   ;;  %s2616_s2 = inlined_call_operand.vmem [shape: bf16[16,144], index: 2, kind: input, shape index: {}]   ;;  %s2617_s3 = inlined_call_operand.vmem [shape: f32[16,1], index: 3, kind: input, shape index: {}]   ;;  %s2618_s4 = inlined_call_operand.vmem [shape: bf16[16,144], index: 4, kind: input, shape index: {}]   ;;  %s2619_s5 = inlined_call_operand.vmem [shape: f32[16,1], index: 5, kind: input, shape index: {}]   ;;  %s2620_s6 = inlined_call_operand.hbm [shape: f32[1,16,512], index: 6, kind: output, shape index: {}]  }
   0x1   :  { %12 = vsyncpa [#allocation7], 0 }
   0x2   :  { %13 = vsyncpa [#allocation5], 0  ;;  %s1492_s21 = smov [#allocation3]   ;;  %s1420_s25 = scalar_lea.hbm %s2614_s0, 1024 }
   0x3   :  { %s19_s22 = sshll.u32 %s1492_s21, 4  ;;  %p1421_p0 = scmp.ne.s32.totalorder %s2614_s0, %s1420_s25  ;;  %s20_s22 = int_to_ptr.vmem [resolvable:$true] %s19_s22 }
   0x4   :  { %p1424_p1 = scmp.lt.u32.totalorder %s1420_s25, %s2614_s0 }
   0x6   :  { %p1426_p2 = pnand %p1424_p1, %p1421_p0 }
   0x8   :  { %1429 = shalt.err (!%p1426_p2)
}
   0x9   :  { %s1430_s30 = scalar_lea.vmem %s20_s22, 1024  ;;  %p1435_p4 = scmp.lt.s32.totalorder %s20_s22, %s20_s22 }
   0xa   :  { %p1431_p3 = scmp.ne.s32.totalorder %s20_s22, %s1430_s30  ;;  %p1436_p5 = scmp.lt.s32.totalorder %s1430_s30, %s1430_s30 }
   0xc   :  { %p1437_p6 = por %p1436_p5, %p1435_p4 }
   0xe   :  { %p1438_p7 = pnand %p1437_p6, %p1431_p3 }
  0x10   :  { %1441 = shalt.err (!%p1438_p7)
}
  0x11   :  { %s1493_s7 = smov 512   ;;  %s1494_s8 = smov 32  }
  0x12   :  { %25 = dma.hbm_to_vmem [thread:$0]  %s2614_s0, 1024, %s20_s22, [#allocation4], %s1493_s7, %s1493_s7, %s1494_s8  }
  0x13   :  { %s1495_s11 = smov [#allocation6]   ;;  %s1442_s15 = scalar_lea.hbm %s2615_s1, 9216 }
  0x14   :  { %s31_s12 = sshll.u32 %s1495_s11, 4  ;;  %p1443_p8 = scmp.ne.s32.totalorder %s2615_s1, %s1442_s15  ;;  %s32_s12 = int_to_ptr.vmem [resolvable:$true] %s31_s12 }
  0x15   :  { %p1446_p9 = scmp.lt.u32.totalorder %s1442_s15, %s2615_s1 }
  0x17   :  { %p1448_p10 = pnand %p1446_p9, %p1443_p8 }
  0x19   :  { %1451 = shalt.err (!%p1448_p10)
}
  0x1a   :  { %s1452_s20 = scalar_lea.vmem %s32_s12, 9216  ;;  %p1457_p12 = scmp.lt.s32.totalorder %s32_s12, %s32_s12 }
  0x1b   :  { %p1453_p11 = scmp.ne.s32.totalorder %s32_s12, %s1452_s20  ;;  %p1458_p13 = scmp.lt.s32.totalorder %s1452_s20, %s1452_s20 }
  0x1d   :  { %p1459_p0 = por %p1458_p13, %p1457_p12 }
  0x1f   :  { %p1460_p1 = pnand %p1459_p0, %p1453_p11 }
  0x21   :  { %1463 = shalt.err (!%p1460_p1)
}
  0x22   :  { %37 = dma.hbm_to_vmem [thread:$0]  %s2615_s1, 9216, %s32_s12, [#allocation7], %s1493_s7, %s1493_s7, %s1494_s8  }
  0x23   :  { %1486 = dma.done.wait [#allocation4], 1024  }
  0x24   :  { %1487 = vsyncadd [#allocation4], 4294966272 }
  0x25   :  { %1488 = dma.done.wait [#allocation7], 9216  }
  0x26   :  { %1489 = vsyncadd [#allocation7], 4294958080  ;;  %v1571_v0 = vld [vmem:[#allocation3 + $0x8] sm:$0xff]  ;;  %v1573_v1 = vld [vmem:[#allocation3] sm:$0xff]  ;;  %s1496_s22 = smov 17   ;;  %s1497_s1 = smov 16   ;;  %v77_v8 = vlaneseq }
  0x27   :  { %65 = vrot.lane.b32.xlu1 %v1571_v0, %s1496_s22  ;;  %61 = vrot.lane.b32.xlu0 %v1573_v1, %s1496_s22  ;;  %v1579_v2 = vld [vmem:[#allocation3 + $0x28] sm:$0xff]  ;;  %v1581_v3 = vld [vmem:[#allocation3 + $0x20] sm:$0xff]  ;;  %v1587_v4 = vld [vmem:[#allocation3 + $0x30] sm:$0xff]  ;;  %s1498_s23 = smov 15   ;;  %s1499_s24 = smov 1   ;;  %vm529_vm0 = vcmask 130048  }
  0x28   :  { %v1589_v5 = vld [vmem:[#allocation3 + $0x10] sm:$0xff]  ;;  %v1595_v6 = vld [vmem:[#allocation3 + $0x38] sm:$0xff]  ;;  %s1500_s25 = smov 127   ;;  %s1501_s26 = smov 113   ;;  %v1699_v9 = vand.u32 127, %v77_v8  ;;  %v89_v14 = vld [vmem:[#allocation6 + $0x8] sm:$0xff] }
  0x29   :  { %v1597_v7 = vld [vmem:[#allocation3 + $0x18] sm:$0xff]  ;;  %s1502_s27 = smov 112   ;;  %s1503_s28 = smov 111   ;;  %v1379_v10 = vld [vmem:[%s2616_s2 + $0x4] ss:$8 sps:$4 sm:$0xff]   ;;  %v1504_v21 = vmov 0  }
  0x2a   :  { %vm79_vm1 = vcmp.lt.s32.totalorder %v1699_v9, 17  ;;  %1355 = vmatprep.mubr.msk.bf16.mxu0 %vm529_vm0, %v1379_v10  ;;  %1356 = vmatprep.mubr.msk.bf16.mxu1 %vm529_vm0, %v1379_v10  ;;  %v93_v15 = vld [vmem:[#allocation6 + $0x28] sm:$0xff]  ;;  %v90_v27 = vld [vmem:[#allocation6 + $0x10] sm:$0xff]  ;;  %v88_v29 = vld [vmem:[#allocation6] sm:$0xff]  ;;  %vm128_vm2 = vcmp.lt.s32.totalorder %v1699_v9, 16  ;;  %vm178_vm3 = vcmp.lt.s32.totalorder %v1699_v9, 15 }
  0x2b   :  { %67 = vrot.lane.b32.xlu1 %v1579_v2, %s1496_s22  ;;  %63 = vrot.lane.b32.xlu0 %v1581_v3, %s1496_s22  ;;  %v94_v28 = vld [vmem:[#allocation6 + $0x30] sm:$0xff]  ;;  %v92_v30 = vld [vmem:[#allocation6 + $0x20] sm:$0xff]  ;;  %v1731_v31 = vld [vmem:[#allocation6 + $0x18] sm:$0xff]  ;;  %vm228_vm4 = vcmp.lt.s32.totalorder %v1699_v9, 1  ;;  %vm286_vm5 = vcmp.lt.s32.totalorder %v1699_v9, 127  ;;  %vm336_vm6 = vcmp.lt.s32.totalorder %v1699_v9, 113 }
  0x2c   :  { %1375 = vset.pattern.permute.xlu0 %v1504_v21  ;;  %1376 = vset.pattern.permute.xlu1 %v1504_v21  ;;  %v1733_v32 = vld [vmem:[#allocation6 + $0x38] sm:$0xff]  ;;  %v508_v33 = vld [vmem:[%s2617_s3] sm:$0xff]  ;;  %v509_v38 = vld [vmem:[%s2617_s3 + $0x8] sm:$0xff]  ;;  %vm386_vm7 = vcmp.lt.s32.totalorder %v1699_v9, 112  ;;  %vm436_vm8 = vcmp.lt.s32.totalorder %v1699_v9, 111 }
  0x2d   :  { %v1752_v52 = vld [vmem:[#allocation6 + $0x68] sm:$0xff]  ;;  %v1762_v63 = vld [vmem:[#allocation6 + $0x70] sm:$0xff] }
  0x2e   :  { %v1754_v53 = vld [vmem:[#allocation6 + $0x48] sm:$0xff]  ;;  %v1766_v10 = vld [vmem:[#allocation6 + $0x50] sm:$0xff] }
  0x2f   :  { %71 = vrot.lane.b32.xlu1 %v1587_v4, %s1496_s22  ;;  %69 = vrot.lane.b32.xlu0 %v1589_v5, %s1496_s22 }
  0x33   :  { %75 = vrot.lane.b32.xlu1 %v1595_v6, %s1496_s22  ;;  %73 = vrot.lane.b32.xlu0 %v1597_v7, %s1496_s22 }
  0x37   :  { %114 = vrot.lane.b32.xlu1 %v1581_v3, %s1497_s1  ;;  %112 = vrot.lane.b32.xlu0 %v1573_v1, %s1497_s1 }
  0x3b   :  { %118 = vrot.lane.b32.xlu1 %v1579_v2, %s1497_s1  ;;  %116 = vrot.lane.b32.xlu0 %v1571_v0, %s1497_s1 }
  0x3f   :  { %122 = vrot.lane.b32.xlu1 %v1587_v4, %s1497_s1  ;;  %120 = vrot.lane.b32.xlu0 %v1589_v5, %s1497_s1 }
  0x43   :  { %126 = vrot.lane.b32.xlu1 %v1595_v6, %s1497_s1  ;;  %124 = vrot.lane.b32.xlu0 %v1597_v7, %s1497_s1 }
  0x47   :  { %164 = vrot.lane.b32.xlu1 %v1581_v3, %s1498_s23  ;;  %162 = vrot.lane.b32.xlu0 %v1573_v1, %s1498_s23 }
  0x4b   :  { %168 = vrot.lane.b32.xlu1 %v1579_v2, %s1498_s23  ;;  %166 = vrot.lane.b32.xlu0 %v1571_v0, %s1498_s23 }
  0x4f   :  { %172 = vrot.lane.b32.xlu1 %v1587_v4, %s1498_s23  ;;  %170 = vrot.lane.b32.xlu0 %v1589_v5, %s1498_s23 }
  0x53   :  { %176 = vrot.lane.b32.xlu1 %v1595_v6, %s1498_s23  ;;  %174 = vrot.lane.b32.xlu0 %v1597_v7, %s1498_s23 }
  0x57   :  { %214 = vrot.lane.b32.xlu1 %v1581_v3, %s1499_s24  ;;  %212 = vrot.lane.b32.xlu0 %v1573_v1, %s1499_s24 }
  0x5b   :  { %218 = vrot.lane.b32.xlu1 %v1579_v2, %s1499_s24  ;;  %216 = vrot.lane.b32.xlu0 %v1571_v0, %s1499_s24 }
  0x5f   :  { %222 = vrot.lane.b32.xlu1 %v1587_v4, %s1499_s24  ;;  %220 = vrot.lane.b32.xlu0 %v1589_v5, %s1499_s24 }
  0x63   :  { %226 = vrot.lane.b32.xlu1 %v1595_v6, %s1499_s24  ;;  %224 = vrot.lane.b32.xlu0 %v1597_v7, %s1499_s24 }
  0x67   :  { %272 = vrot.lane.b32.xlu1 %v1581_v3, %s1500_s25  ;;  %270 = vrot.lane.b32.xlu0 %v1573_v1, %s1500_s25 }
  0x6b   :  { %276 = vrot.lane.b32.xlu1 %v1579_v2, %s1500_s25  ;;  %274 = vrot.lane.b32.xlu0 %v1571_v0, %s1500_s25 }
  0x6f   :  { %280 = vrot.lane.b32.xlu1 %v1587_v4, %s1500_s25  ;;  %278 = vrot.lane.b32.xlu0 %v1589_v5, %s1500_s25 }
  0x73   :  { %284 = vrot.lane.b32.xlu1 %v1595_v6, %s1500_s25  ;;  %282 = vrot.lane.b32.xlu0 %v1597_v7, %s1500_s25 }
  0x77   :  { %322 = vrot.lane.b32.xlu1 %v1581_v3, %s1501_s26  ;;  %320 = vrot.lane.b32.xlu0 %v1573_v1, %s1501_s26 }
  0x7b   :  { %326 = vrot.lane.b32.xlu1 %v1579_v2, %s1501_s26  ;;  %324 = vrot.lane.b32.xlu0 %v1571_v0, %s1501_s26 }
  0x7f   :  { %330 = vrot.lane.b32.xlu1 %v1587_v4, %s1501_s26  ;;  %328 = vrot.lane.b32.xlu0 %v1589_v5, %s1501_s26 }
  0x83   :  { %334 = vrot.lane.b32.xlu1 %v1595_v6, %s1501_s26  ;;  %332 = vrot.lane.b32.xlu0 %v1597_v7, %s1501_s26 }
  0x87   :  { %372 = vrot.lane.b32.xlu1 %v1581_v3, %s1502_s27  ;;  %370 = vrot.lane.b32.xlu0 %v1573_v1, %s1502_s27 }
  0x8b   :  { %376 = vrot.lane.b32.xlu1 %v1579_v2, %s1502_s27  ;;  %374 = vrot.lane.b32.xlu0 %v1571_v0, %s1502_s27 }
  0x8f   :  { %380 = vrot.lane.b32.xlu1 %v1587_v4, %s1502_s27  ;;  %378 = vrot.lane.b32.xlu0 %v1589_v5, %s1502_s27 }
  0x93   :  { %384 = vrot.lane.b32.xlu1 %v1595_v6, %s1502_s27  ;;  %382 = vrot.lane.b32.xlu0 %v1597_v7, %s1502_s27 }
  0x97   :  { %422 = vrot.lane.b32.xlu1 %v1581_v3, %s1503_s28  ;;  %420 = vrot.lane.b32.xlu0 %v1573_v1, %s1503_s28 }
  0x99   :  { %v66_v11 = vpop.permute.xlu1 %65  ;;  %v62_v12 = vpop.permute.xlu0 %61 }
  0x9a   :  { %v84_v13 = vsel %vm79_vm1, %v62_v12, %v66_v11 }
  0x9b   :  { %426 = vrot.lane.b32.xlu1 %v1579_v2, %s1503_s28  ;;  %424 = vrot.lane.b32.xlu0 %v1571_v0, %s1503_s28  ;;  %v97_v19 = vmul.f32 %v89_v14, %v84_v13  ;;  %v1772_v13 = vld [vmem:[#allocation6 + $0x78] sm:$0xff]  ;;  %v1774_v14 = vld [vmem:[#allocation6 + $0x40] sm:$0xff] }
  0x9d   :  { %v68_v16 = vpop.permute.xlu1 %67  ;;  %v64_v17 = vpop.permute.xlu0 %63 }
  0x9e   :  { %v85_v18 = vsel %vm79_vm1, %v64_v17, %v68_v16 }
  0x9f   :  { %430 = vrot.lane.b32.xlu1 %v1587_v4, %s1503_s28  ;;  %428 = vrot.lane.b32.xlu0 %v1589_v5, %s1503_s28  ;;  %v101_v20 = vmul.f32 %v93_v15, %v85_v18  ;;  %v1776_v15 = vld [vmem:[#allocation6 + $0x58] sm:$0xff] }
  0xa1   :  { %v72_v22 = vpop.permute.xlu1 %71  ;;  %v70_v23 = vpop.permute.xlu0 %69  ;;  %v105_v24 = vpack.c.bf16 %v101_v20, %v97_v19 }
  0xa2   :  { %v83_v25 = vsel %vm79_vm1, %v68_v16, %v72_v22  ;;  %v82_v26 = vsel %vm79_vm1, %v66_v11, %v70_v23 }
  0xa3   :  { %434 = vrot.lane.b32.xlu1 %v1595_v6, %s1503_s28  ;;  %432 = vrot.lane.b32.xlu0 %v1597_v7, %s1503_s28  ;;  %v98_v36 = vmul.f32 %v90_v27, %v82_v26  ;;  %v102_v37 = vmul.f32 %v94_v28, %v83_v25 }
  0xa4   :  { %533 = vmatprep.subr.bf16.mxu0 %v105_v24 }
  0xa5   :  { %v76_v34 = vpop.permute.xlu1 %75  ;;  %v74_v35 = vpop.permute.xlu0 %73  ;;  %v106_v51 = vpack.c.bf16 %v102_v37, %v98_v36  ;;  %v1795_v36 = vld [vmem:[#allocation6 + $0x88] sm:$0xff] }
  0xa6   :  { %v87_v39 = vsel %vm79_vm1, %v76_v34, %v64_v17  ;;  %v86_v40 = vsel %vm79_vm1, %v74_v35, %v62_v12  ;;  %v80_v41 = vsel %vm79_vm1, %v70_v23, %v74_v35  ;;  %v81_v42 = vsel %vm79_vm1, %v72_v22, %v76_v34  ;;  %v1770_v12 = vld [vmem:[#allocation6 + $0x60] sm:$0xff]  ;;  %v1793_v35 = vld [vmem:[#allocation6 + $0xa8] sm:$0xff] }
  0xa7   :  { %v96_v43 = vmul.f32 %v88_v29, %v86_v40  ;;  %v100_v44 = vmul.f32 %v92_v30, %v87_v39  ;;  %v99_v45 = vmul.f32 %v1731_v31, %v80_v41  ;;  %v103_v46 = vmul.f32 %v1733_v32, %v81_v42  ;;  %512 = vperm.xlu0 %1375, %v508_v33  }
  0xa8   :  { %517 = vperm.xlu1 %1376, %v509_v38  }
  0xa9   :  { %v115_v47 = vpop.permute.xlu1 %114  ;;  %v113_v48 = vpop.permute.xlu0 %112  ;;  %v104_v49 = vpack.c.bf16 %v100_v44, %v96_v43  ;;  %v107_v50 = vpack.c.bf16 %v103_v46, %v99_v45  ;;  %v1803_v46 = vld [vmem:[#allocation6 + $0xb0] sm:$0xff] }
  0xab   :  { %534 = vmatpush1.bf16.msra.mxu0 %v104_v49  ;;  %576 = vmatprep.subr.bf16.mxu1 %v107_v50  ;;  %v1811_v50 = vld [vmem:[#allocation6 + $0xa0] sm:$0xff] }
  0xac   :  { %577 = vmatpush1.bf16.msra.mxu1 %v106_v51  ;;  %v1813_v51 = vld [vmem:[#allocation6 + $0xb8] sm:$0xff] }
  0xad   :  { %v119_v54 = vpop.permute.xlu1 %118  ;;  %v117_v55 = vpop.permute.xlu0 %116 }
  0xae   :  { %v134_v56 = vsel %vm128_vm2, %v115_v47, %v119_v54  ;;  %v133_v57 = vsel %vm128_vm2, %v113_v48, %v117_v55 }
  0xaf   :  { %v151_v58 = vmul.f32 %v1752_v52, %v134_v56  ;;  %v147_v59 = vmul.f32 %v1754_v53, %v133_v57 }
  0xb1   :  { %v123_v60 = vpop.permute.xlu1 %122  ;;  %v121_v61 = vpop.permute.xlu0 %120  ;;  %v155_v62 = vpack.c.bf16 %v151_v58, %v147_v59 }
  0xb2   :  { %v132_v8 = vsel %vm128_vm2, %v119_v54, %v123_v60  ;;  %v131_v11 = vsel %vm128_vm2, %v117_v55, %v121_v61  ;;  %v1815_v54 = vld [vmem:[#allocation6 + $0x80] sm:$0xff]  ;;  %v1817_v55 = vld [vmem:[#allocation6 + $0x98] sm:$0xff] }
  0xb3   :  { %535 = vmatprep.subr.bf16.mxu0 %v155_v62  ;;  %v152_v16 = vmul.f32 %v1762_v63, %v132_v8  ;;  %v148_v17 = vmul.f32 %v1766_v10, %v131_v11 }
  0xb5   :  { %v127_v18 = vpop.permute.xlu1 %126  ;;  %v125_v19 = vpop.permute.xlu0 %124  ;;  %v156_v34 = vpack.c.bf16 %v152_v16, %v148_v17 }
  0xb6   :  { %v130_v20 = vsel %vm128_vm2, %v123_v60, %v127_v18  ;;  %v136_v21 = vsel %vm128_vm2, %v127_v18, %v115_v47  ;;  %v129_v22 = vsel %vm128_vm2, %v121_v61, %v125_v19  ;;  %v135_v23 = vsel %vm128_vm2, %v125_v19, %v113_v48  ;;  %v1807_v48 = vld [vmem:[#allocation6 + $0x90] sm:$0xff] }
  0xb7   :  { %v150_v24 = vmul.f32 %v1770_v12, %v136_v21  ;;  %v153_v25 = vmul.f32 %v1772_v13, %v130_v20  ;;  %v146_v26 = vmul.f32 %v1774_v14, %v135_v23  ;;  %v149_v27 = vmul.f32 %v1776_v15, %v129_v22 }
  0xb9   :  { %v165_v28 = vpop.permute.xlu1 %164  ;;  %v163_v29 = vpop.permute.xlu0 %162  ;;  %v154_v30 = vpack.c.bf16 %v150_v24, %v146_v26  ;;  %v157_v33 = vpack.c.bf16 %v153_v25, %v149_v27  ;;  %v243_v24 = vld [vmem:[#allocation6 + $0xe8] sm:$0xff] }
  0xba   :  { %v239_v25 = vld [vmem:[#allocation6 + $0xc8] sm:$0xff] }
  0xbb   :  { %536 = vmatpush1.bf16.msra.mxu0 %v154_v30  ;;  %578 = vmatprep.subr.bf16.mxu1 %v157_v33 }
  0xbc   :  { %579 = vmatpush1.bf16.msra.mxu1 %v156_v34 }
  0xbd   :  { %v169_v37 = vpop.permute.xlu1 %168  ;;  %v167_v38 = vpop.permute.xlu0 %166 }
  0xbe   :  { %v184_v39 = vsel %vm178_vm3, %v165_v28, %v169_v37  ;;  %v183_v40 = vsel %vm178_vm3, %v163_v29, %v167_v38 }
  0xbf   :  { %v201_v41 = vmul.f32 %v1793_v35, %v184_v39  ;;  %v197_v42 = vmul.f32 %v1795_v36, %v183_v40  ;;  %v1838_v39 = vld [vmem:[#allocation6 + $0xf0] sm:$0xff] }
  0xc1   :  { %v173_v43 = vpop.permute.xlu1 %172  ;;  %v171_v44 = vpop.permute.xlu0 %170  ;;  %v205_v45 = vpack.c.bf16 %v201_v41, %v197_v42  ;;  %v1842_v41 = vld [vmem:[#allocation6 + $0xd0] sm:$0xff] }
  0xc2   :  { %v182_v47 = vsel %vm178_vm3, %v169_v37, %v173_v43  ;;  %v181_v49 = vsel %vm178_vm3, %v167_v38, %v171_v44 }
  0xc3   :  { %537 = vmatprep.subr.bf16.mxu0 %v205_v45  ;;  %v202_v56 = vmul.f32 %v1803_v46, %v182_v47  ;;  %v198_v57 = vmul.f32 %v1807_v48, %v181_v49  ;;  %v238_v45 = vld [vmem:[#allocation6 + $0xc0] sm:$0xff]  ;;  %v1848_v47 = vld [vmem:[#allocation6 + $0xd8] sm:$0xff] }
  0xc5   :  { %v177_v58 = vpop.permute.xlu1 %176  ;;  %v175_v59 = vpop.permute.xlu0 %174  ;;  %v206_v23 = vpack.c.bf16 %v202_v56, %v198_v57 }
  0xc6   :  { %v180_v60 = vsel %vm178_vm3, %v173_v43, %v177_v58  ;;  %v186_v61 = vsel %vm178_vm3, %v177_v58, %v165_v28  ;;  %v179_v62 = vsel %vm178_vm3, %v171_v44, %v175_v59  ;;  %v185_v8 = vsel %vm178_vm3, %v175_v59, %v163_v29  ;;  %v242_v43 = vld [vmem:[#allocation6 + $0xe0] sm:$0xff]  ;;  %v1846_v44 = vld [vmem:[#allocation6 + $0xf8] sm:$0xff] }
  0xc7   :  { %v200_v11 = vmul.f32 %v1811_v50, %v186_v61  ;;  %v203_v16 = vmul.f32 %v1813_v51, %v180_v60  ;;  %v196_v17 = vmul.f32 %v1815_v54, %v185_v8  ;;  %v199_v18 = vmul.f32 %v1817_v55, %v179_v62 }
  0xc9   :  { %v215_v19 = vpop.permute.xlu1 %214  ;;  %v213_v20 = vpop.permute.xlu0 %212  ;;  %v204_v21 = vpack.c.bf16 %v200_v11, %v196_v17  ;;  %v207_v22 = vpack.c.bf16 %v203_v16, %v199_v18  ;;  %v263_v18 = vpack.c.bf16 %v1579_v2, %v1571_v0  ;;  %v264_v0 = vpack.c.bf16 %v1587_v4, %v1589_v5 }
  0xcb   :  { %538 = vmatpush1.bf16.msra.mxu0 %v204_v21  ;;  %580 = vmatprep.subr.bf16.mxu1 %v207_v22 }
  0xcc   :  { %581 = vmatpush1.bf16.msra.mxu1 %v206_v23 }
  0xcd   :  { %v219_v26 = vpop.permute.xlu1 %218  ;;  %v217_v27 = vpop.permute.xlu0 %216 }
  0xce   :  { %v234_v28 = vsel %vm228_vm4, %v215_v19, %v219_v26  ;;  %v233_v29 = vsel %vm228_vm4, %v213_v20, %v217_v27 }
  0xcf   :  { %v251_v30 = vmul.f32 %v243_v24, %v234_v28  ;;  %v247_v33 = vmul.f32 %v239_v25, %v233_v29  ;;  %v301_v29 = vld [vmem:[#allocation6 + $0x168] sm:$0xff] }
  0xd1   :  { %v223_v34 = vpop.permute.xlu1 %222  ;;  %v221_v37 = vpop.permute.xlu0 %220  ;;  %v255_v38 = vpack.c.bf16 %v251_v30, %v247_v33  ;;  %v297_v30 = vld [vmem:[#allocation6 + $0x148] sm:$0xff] }
  0xd2   :  { %v232_v40 = vsel %vm228_vm4, %v219_v26, %v223_v34  ;;  %v231_v42 = vsel %vm228_vm4, %v217_v27, %v221_v37  ;;  %v300_v27 = vld [vmem:[#allocation6 + $0x160] sm:$0xff] }
  0xd3   :  { %539 = vmatprep.subr.bf16.mxu0 %v255_v38  ;;  %v252_v49 = vmul.f32 %v1838_v39, %v232_v40  ;;  %v248_v56 = vmul.f32 %v1842_v41, %v231_v42  ;;  %v1879_v40 = vld [vmem:[#allocation6 + $0x170] sm:$0xff]  ;;  %v1881_v42 = vld [vmem:[#allocation6 + $0x178] sm:$0xff] }
  0xd5   :  { %v227_v57 = vpop.permute.xlu1 %226  ;;  %v225_v58 = vpop.permute.xlu0 %224  ;;  %v256_v25 = vpack.c.bf16 %v252_v49, %v248_v56 }
  0xd6   :  { %v230_v59 = vsel %vm228_vm4, %v223_v34, %v227_v57  ;;  %v236_v60 = vsel %vm228_vm4, %v227_v57, %v215_v19  ;;  %v229_v61 = vsel %vm228_vm4, %v221_v37, %v225_v58  ;;  %v235_v62 = vsel %vm228_vm4, %v225_v58, %v213_v20 }
  0xd7   :  { %v250_v8 = vmul.f32 %v242_v43, %v236_v60  ;;  %v253_v11 = vmul.f32 %v1846_v44, %v230_v59  ;;  %v246_v16 = vmul.f32 %v238_v45, %v235_v62  ;;  %v249_v17 = vmul.f32 %v1848_v47, %v229_v61  ;;  %v1883_v43 = vld [vmem:[#allocation6 + $0x150] sm:$0xff]  ;;  %v1885_v45 = vld [vmem:[#allocation6 + $0x158] sm:$0xff] }
  0xd8   :  { %v265_v19 = vpack.c.bf16 %v1595_v6, %v1597_v7  ;;  %v262_v20 = vpack.c.bf16 %v1581_v3, %v1573_v1  ;;  %v296_v7 = vld [vmem:[#allocation6 + $0x140] sm:$0xff] }
  0xd9   :  { %v273_v21 = vpop.permute.xlu1 %272  ;;  %v271_v22 = vpop.permute.xlu0 %270  ;;  %v254_v23 = vpack.c.bf16 %v250_v8, %v246_v16  ;;  %v257_v24 = vpack.c.bf16 %v253_v11, %v249_v17 }
  0xdb   :  { %540 = vmatpush1.bf16.msra.mxu0 %v254_v23  ;;  %582 = vmatprep.subr.bf16.mxu1 %v257_v24 }
  0xdc   :  { %583 = vmatpush1.bf16.msra.mxu1 %v256_v25  ;;  %541 = vmatprep.subr.bf16.mxu0 %v263_v18  ;;  %v1900_v25 = vld [vmem:[#allocation6 + $0x1a0] sm:$0xff] }
  0xdd   :  { %v277_v2 = vpop.permute.xlu1 %276  ;;  %v275_v26 = vpop.permute.xlu0 %274  ;;  %584 = vmatprep.subr.bf16.mxu1 %v265_v19  ;;  %2639 = vst [vmem:[#allocation12_spill] sm:$0xff] %v1900_v25 }
  0xde   :  { %v292_v6 = vsel %vm286_vm5, %v273_v21, %v277_v2  ;;  %v291_v28 = vsel %vm286_vm5, %v271_v22, %v275_v26 }
  0xdf   :  { %542 = vmatpush1.bf16.msra.mxu0 %v262_v20  ;;  %v308_v1 = vmul.f32 %v300_v27, %v292_v6  ;;  %v304_v3 = vmul.f32 %v296_v7, %v291_v28  ;;  %v1908_v27 = vld [vmem:[#allocation6 + $0x188] sm:$0xff] }
  0xe0   :  { %585 = vmatpush1.bf16.msra.mxu1 %v264_v0  ;;  %v346_v0 = vld [vmem:[#allocation6 + $0x180] sm:$0xff]  ;;  %2641 = vst [vmem:[#allocation14_spill] sm:$0xff] %v1908_v27 }
  0xe1   :  { %v281_v33 = vpop.permute.xlu1 %280  ;;  %v279_v34 = vpop.permute.xlu0 %278  ;;  %v312_v58 = vpack.c.bf16 %v308_v1, %v304_v3 }
  0xe2   :  { %v290_v4 = vsel %vm286_vm5, %v277_v2, %v281_v33  ;;  %v289_v5 = vsel %vm286_vm5, %v275_v26, %v279_v34  ;;  %v1906_v26 = vld [vmem:[#allocation6 + $0x1a8] sm:$0xff] }
  0xe3   :  { %v309_v37 = vmul.f32 %v301_v29, %v290_v4  ;;  %v305_v38 = vmul.f32 %v297_v30, %v289_v5  ;;  %2640 = vst [vmem:[#allocation13_spill] sm:$0xff] %v1906_v26  ;;  %v1919_v4 = vld [vmem:[#allocation6 + $0x1b8] sm:$0xff]  ;;  %v1921_v5 = vld [vmem:[#allocation6 + $0x190] sm:$0xff] }
  0xe5   :  { %v285_v49 = vpop.permute.xlu1 %284  ;;  %v283_v56 = vpop.permute.xlu0 %282  ;;  %v313_v57 = vpack.c.bf16 %v309_v37, %v305_v38  ;;  %v1923_v37 = vld [vmem:[#allocation6 + $0x198] sm:$0xff] }
  0xe6   :  { %v288_v59 = vsel %vm286_vm5, %v281_v33, %v285_v49  ;;  %v294_v60 = vsel %vm286_vm5, %v285_v49, %v273_v21  ;;  %v287_v61 = vsel %vm286_vm5, %v279_v34, %v283_v56  ;;  %v293_v62 = vsel %vm286_vm5, %v283_v56, %v271_v22  ;;  %v1917_v34 = vld [vmem:[#allocation6 + $0x1b0] sm:$0xff] }
  0xe7   :  { %v310_v8 = vmul.f32 %v1879_v40, %v288_v59  ;;  %v311_v11 = vmul.f32 %v1881_v42, %v294_v60  ;;  %v306_v16 = vmul.f32 %v1883_v43, %v287_v61  ;;  %v307_v17 = vmul.f32 %v1885_v45, %v293_v62  ;;  %543 = vmatprep.subr.bf16.mxu0 %v313_v57 }
  0xe8   :  { %544 = vmatpush1.bf16.msra.mxu0 %v312_v58 }
  0xe9   :  { %v323_v18 = vpop.permute.xlu1 %322  ;;  %v321_v23 = vpop.permute.xlu0 %320  ;;  %v315_v24 = vpack.c.bf16 %v311_v11, %v307_v17  ;;  %v314_v21 = vpack.c.bf16 %v310_v8, %v306_v16 }
  0xeb   :  { %586 = vmatprep.subr.bf16.mxu1 %v315_v24 }
  0xec   :  { %587 = vmatpush1.bf16.msra.mxu1 %v314_v21 }
  0xed   :  { %v327_v19 = vpop.permute.xlu1 %326  ;;  %v325_v22 = vpop.permute.xlu0 %324 }
  0xee   :  { %v342_v20 = vsel %vm336_vm6, %v323_v18, %v327_v19  ;;  %v341_v2 = vsel %vm336_vm6, %v321_v23, %v325_v22 }
  0xef   :  { %v358_v6 = vmul.f32 %v1900_v25, %v342_v20  ;;  %v354_v7 = vmul.f32 %v346_v0, %v341_v2  ;;  %v1942_v0 = vld [vmem:[#allocation6 + $0x1c0] sm:$0xff] }
  0xf0   :  { %2643 = vst [vmem:[#allocation16_spill] sm:$0xff] %v1942_v0 }
  0xf1   :  { %v331_v28 = vpop.permute.xlu1 %330  ;;  %v329_v29 = vpop.permute.xlu0 %328  ;;  %v362_v57 = vpack.c.bf16 %v358_v6, %v354_v7  ;;  %v1946_v6 = vld [vmem:[#allocation6 + $0x1e8] sm:$0xff] }
  0xf2   :  { %v340_v30 = vsel %vm336_vm6, %v327_v19, %v331_v28  ;;  %v339_v1 = vsel %vm336_vm6, %v325_v22, %v329_v29  ;;  %v1938_v22 = vld [vmem:[#allocation6 + $0x1e0] sm:$0xff]  ;;  %2644 = vst [vmem:[#allocation17_spill] sm:$0xff] %v1946_v6  ;;  %v1948_v7 = vld [vmem:[#allocation6 + $0x1c8] sm:$0xff] }
  0xf3   :  { %v359_v3 = vmul.f32 %v1906_v26, %v340_v30  ;;  %v355_v33 = vmul.f32 %v1908_v27, %v339_v1  ;;  %2642 = vst [vmem:[#allocation15_spill] sm:$0xff] %v1938_v22  ;;  %2645 = vst [vmem:[#allocation18_spill] sm:$0xff] %v1948_v7 }
  0xf5   :  { %v335_v38 = vpop.permute.xlu1 %334  ;;  %v333_v49 = vpop.permute.xlu0 %332  ;;  %v363_v56 = vpack.c.bf16 %v359_v3, %v355_v33 }
  0xf6   :  { %v338_v58 = vsel %vm336_vm6, %v331_v28, %v335_v38  ;;  %v344_v59 = vsel %vm336_vm6, %v335_v38, %v323_v18  ;;  %v337_v60 = vsel %vm336_vm6, %v329_v29, %v333_v49  ;;  %v343_v61 = vsel %vm336_vm6, %v333_v49, %v321_v23 }
  0xf7   :  { %v360_v62 = vmul.f32 %v1917_v34, %v338_v58  ;;  %v361_v8 = vmul.f32 %v1919_v4, %v344_v59  ;;  %v356_v11 = vmul.f32 %v1921_v5, %v337_v60  ;;  %v357_v16 = vmul.f32 %v1923_v37, %v343_v61  ;;  %545 = vmatprep.subr.bf16.mxu0 %v363_v56  ;;  %v1958_v56 = vld [vmem:[#allocation6 + $0x1f0] sm:$0xff]  ;;  %v1964_v59 = vld [vmem:[#allocation6 + $0x1d8] sm:$0xff] }
  0xf8   :  { %546 = vmatpush1.bf16.msra.mxu0 %v362_v57  ;;  %v1960_v57 = vld [vmem:[#allocation6 + $0x1f8] sm:$0xff]  ;;  %v1962_v58 = vld [vmem:[#allocation6 + $0x1d0] sm:$0xff]  ;;  %2648 = vst [vmem:[#allocation21_spill] sm:$0xff] %v1964_v59 }
  0xf9   :  { %v373_v17 = vpop.permute.xlu1 %372  ;;  %v371_v24 = vpop.permute.xlu0 %370  ;;  %v365_v21 = vpack.c.bf16 %v361_v8, %v357_v16  ;;  %v364_v18 = vpack.c.bf16 %v360_v62, %v356_v11  ;;  %2646 = vst [vmem:[#allocation19_spill] sm:$0xff] %v1960_v57  ;;  %2647 = vst [vmem:[#allocation20_spill] sm:$0xff] %v1962_v58 }
  0xfb   :  { %588 = vmatprep.subr.bf16.mxu1 %v365_v21 }
  0xfc   :  { %589 = vmatpush1.bf16.msra.mxu1 %v364_v18 }
  0xfd   :  { %v377_v19 = vpop.permute.xlu1 %376  ;;  %v375_v23 = vpop.permute.xlu0 %374 }
  0xfe   :  { %v392_v20 = vsel %vm386_vm7, %v373_v17, %v377_v19  ;;  %v391_v2 = vsel %vm386_vm7, %v371_v24, %v375_v23 }
  0xff   :  { %v408_v28 = vmul.f32 %v1938_v22, %v392_v20  ;;  %v404_v29 = vmul.f32 %v1942_v0, %v391_v2 }
 0x101   :  { %v381_v30 = vpop.permute.xlu1 %380  ;;  %v379_v1 = vpop.permute.xlu0 %378  ;;  %v412_v8 = vpack.c.bf16 %v408_v28, %v404_v29 }
 0x102   :  { %v390_v3 = vsel %vm386_vm7, %v377_v19, %v381_v30  ;;  %v389_v33 = vsel %vm386_vm7, %v375_v23, %v379_v1 }
 0x103   :  { %v409_v38 = vmul.f32 %v1946_v6, %v390_v3  ;;  %v405_v49 = vmul.f32 %v1948_v7, %v389_v33  ;;  %v1979_v3 = vld [vmem:[#allocation6 + $0x220] sm:$0xff] }
 0x104   :  { %2649 = vst [vmem:[#allocation22_spill] sm:$0xff] %v1979_v3 }
 0x105   :  { %v385_v60 = vpop.permute.xlu1 %384  ;;  %v383_v61 = vpop.permute.xlu0 %382  ;;  %v413_v62 = vpack.c.bf16 %v409_v38, %v405_v49  ;;  %v1983_v38 = vld [vmem:[#allocation6 + $0x200] sm:$0xff] }
 0x106   :  { %v388_v11 = vsel %vm386_vm7, %v381_v30, %v385_v60  ;;  %v394_v16 = vsel %vm386_vm7, %v385_v60, %v373_v17  ;;  %v387_v21 = vsel %vm386_vm7, %v379_v1, %v383_v61  ;;  %v393_v18 = vsel %vm386_vm7, %v383_v61, %v371_v24  ;;  %2650 = vst [vmem:[#allocation23_spill] sm:$0xff] %v1983_v38  ;;  %v1987_v60 = vld [vmem:[#allocation6 + $0x228] sm:$0xff] }
 0x107   :  { %v410_v19 = vmul.f32 %v1958_v56, %v388_v11  ;;  %v411_v23 = vmul.f32 %v1960_v57, %v394_v16  ;;  %v406_v20 = vmul.f32 %v1962_v58, %v387_v21  ;;  %v407_v2 = vmul.f32 %v1964_v59, %v393_v18  ;;  %547 = vmatprep.subr.bf16.mxu0 %v413_v62  ;;  %v1989_v61 = vld [vmem:[#allocation6 + $0x208] sm:$0xff] }
 0x108   :  { %548 = vmatpush1.bf16.msra.mxu0 %v412_v8  ;;  %2651 = vst [vmem:[#allocation24_spill] sm:$0xff] %v1987_v60  ;;  %2652 = vst [vmem:[#allocation25_spill] sm:$0xff] %v1989_v61 }
 0x109   :  { %v423_v28 = vpop.permute.xlu1 %422  ;;  %v421_v29 = vpop.permute.xlu0 %420  ;;  %v415_v30 = vpack.c.bf16 %v411_v23, %v407_v2  ;;  %v414_v17 = vpack.c.bf16 %v410_v19, %v406_v20  ;;  %v1999_v20 = vld [vmem:[#allocation6 + $0x230] sm:$0xff]  ;;  %v2001_v2 = vld [vmem:[#allocation6 + $0x238] sm:$0xff] }
 0x10a   :  { %2653 = vst [vmem:[#allocation26_spill] sm:$0xff] %v1999_v20  ;;  %2654 = vst [vmem:[#allocation27_spill] sm:$0xff] %v2001_v2 }
 0x10b   :  { %590 = vmatprep.subr.bf16.mxu1 %v415_v30  ;;  %v2003_v30 = vld [vmem:[#allocation6 + $0x210] sm:$0xff] }
 0x10c   :  { %591 = vmatpush1.bf16.msra.mxu1 %v414_v17  ;;  %2655 = vst [vmem:[#allocation28_spill] sm:$0xff] %v2003_v30  ;;  %v2005_v17 = vld [vmem:[#allocation6 + $0x218] sm:$0xff] }
 0x10d   :  { %v427_v1 = vpop.permute.xlu1 %426  ;;  %v425_v24 = vpop.permute.xlu0 %424  ;;  %2656 = vst [vmem:[#allocation29_spill] sm:$0xff] %v2005_v17 }
 0x10e   :  { %v442_v33 = vsel %vm436_vm8, %v423_v28, %v427_v1  ;;  %v441_v49 = vsel %vm436_vm8, %v421_v29, %v425_v24 }
 0x10f   :  { %v458_v62 = vmul.f32 %v1979_v3, %v442_v33  ;;  %v454_v8 = vmul.f32 %v1983_v38, %v441_v49 }
 0x111   :  { %v431_v11 = vpop.permute.xlu1 %430  ;;  %v429_v16 = vpop.permute.xlu0 %428  ;;  %v462_v3 = vpack.c.bf16 %v458_v62, %v454_v8  ;;  %v1377_v8 = vld [vmem:[%s2616_s2] ss:$8 sps:$4 sm:$0xff]  }
 0x112   :  { %v440_v21 = vsel %vm436_vm8, %v427_v1, %v431_v11  ;;  %v439_v18 = vsel %vm436_vm8, %v425_v24, %v429_v16 }
 0x113   :  { %v459_v19 = vmul.f32 %v1987_v60, %v440_v21  ;;  %v455_v23 = vmul.f32 %v1989_v61, %v439_v18 }
 0x115   :  { %v435_v33 = vpop.permute.xlu1 %434  ;;  %v433_v49 = vpop.permute.xlu0 %432  ;;  %v463_v38 = vpack.c.bf16 %v459_v19, %v455_v23 }
 0x116   :  { %v438_v1 = vsel %vm436_vm8, %v431_v11, %v435_v33  ;;  %v444_v24 = vsel %vm436_vm8, %v435_v33, %v423_v28  ;;  %v437_v21 = vsel %vm436_vm8, %v429_v16, %v433_v49  ;;  %v443_v18 = vsel %vm436_vm8, %v433_v49, %v421_v29 }
 0x117   :  { %v460_v61 = vmul.f32 %v1999_v20, %v438_v1  ;;  %v461_v60 = vmul.f32 %v2001_v2, %v444_v24  ;;  %v456_v0 = vmul.f32 %v2003_v30, %v437_v21  ;;  %v457_v62 = vmul.f32 %v2005_v17, %v443_v18  ;;  %549 = vmatprep.subr.bf16.mxu0 %v463_v38 }
 0x118   :  { %550 = vmatpush1.bf16.msra.mxu0 %v462_v3 }
 0x119   :  { %v465_v28 = vpack.c.bf16 %v461_v60, %v457_v62  ;;  %v464_v11 = vpack.c.bf16 %v460_v61, %v456_v0 }
 0x11b   :  { %566 = vmatmul.mubr.bf16.vlgmr.msra.gmra.mrb[0].mxu0 %v1377_v8  ;;  %592 = vmatprep.subr.bf16.mxu1 %v465_v28 }
 0x11c   :  { %593 = vmatpush1.bf16.msra.mxu1 %v464_v11 }
 0x11f   :  { %609 = vmatmul.mubr.bf16.vlgmr.msra.gmra.mrb[0].mxu1 %v1377_v8 }
 0x126   :  { %v513_v29 = vpop.permute.xlu0 %512 }
 0x127   :  { %v518_v38 = vpop.permute.xlu1 %517 }
 0x1ee   :  { %v567_v16 = vpop.f32.mrb[0].mxu0 }
 0x1ef   :  { %v2022_v19 = vadd.f32 %v567_v16, %v513_v29  ;;  %v569_v23 = vpop.f32.mrb[1].mxu0 }
 0x1f0   :  { %v2024_v33 = vadd.f32 %v569_v23, %v513_v29  ;;  %v571_v49 = vpop.f32.mrb[2].mxu0 }
 0x1f1   :  { %v573_v1 = vpop.f32.mrb[3].mxu0  ;;  %v2032_v21 = vadd.f32 %v571_v49, %v518_v38 }
 0x1f2   :  { %v610_v24 = vpop.f32.mrb[0].mxu1  ;;  %v619_v3 = vadd.f32 %v2024_v33, %v2022_v19  ;;  %v2034_v18 = vadd.f32 %v573_v1, %v518_v38 }
 0x1f3   :  { %v2028_v60 = vadd.f32 %v610_v24, %v513_v29  ;;  %v612_v0 = vpop.f32.mrb[1].mxu1  ;;  %v626_v24 = vmul.f32 %v2024_v33, %v2024_v33 }
 0x1f4   :  { %v2030_v61 = vadd.f32 %v612_v0, %v513_v29  ;;  %v614_v62 = vpop.f32.mrb[2].mxu1  ;;  %620 = vadd.xlane.f32.xlu1 %v619_v3  ;;  %v627_v29 = vmul.f32 %v2032_v21, %v2032_v21  ;;  %v628_v49 = vmul.f32 %v2034_v18, %v2034_v18  ;;  %v622_v1 = vadd.f32 %v2034_v18, %v2032_v21 }
 0x1f5   :  { %v2036_v8 = vadd.f32 %v614_v62, %v518_v38  ;;  %v616_v28 = vpop.f32.mrb[3].mxu1 }
 0x1f6   :  { %v2038_v11 = vadd.f32 %v616_v28, %v518_v38  ;;  %v655_v16 = vadd.f32 %v2030_v61, %v2028_v60  ;;  %v625_v38 = vmul.f32 %v2022_v19, %v2022_v19  ;;  %v632_v3 = vadd.f32 %v628_v49, %v627_v29 }
 0x1f7   :  { %v663_v0 = vmul.f32 %v2036_v8, %v2036_v8 }
 0x1f8   :  { %656 = vadd.xlane.f32.xlu0 %v655_v16  ;;  %v658_v23 = vadd.f32 %v2038_v11, %v2036_v8  ;;  %v664_v62 = vmul.f32 %v2038_v11, %v2038_v11  ;;  %v629_v28 = vadd.f32 %v626_v24, %v625_v38  ;;  %v661_v16 = vmul.f32 %v2028_v60, %v2028_v60 }
 0x1fa   :  { %659 = vadd.xlane.f32.xlu1 %v658_v23  ;;  %v662_v23 = vmul.f32 %v2030_v61, %v2030_v61  ;;  %v668_v17 = vadd.f32 %v664_v62, %v663_v0 }
 0x1fc   :  { %623 = vadd.xlane.f32.xlu0 %v622_v1  ;;  %v665_v30 = vadd.f32 %v662_v23, %v661_v16 }
 0x1fe   :  { %633 = vadd.xlane.f32.xlu1 %v632_v3 }
 0x200   :  { %630 = vadd.xlane.f32.xlu0 %v629_v28 }
 0x202   :  { %669 = vadd.xlane.f32.xlu1 %v668_v17 }
 0x204   :  { %666 = vadd.xlane.f32.xlu0 %v665_v30 }
 0x281   :  { %v621_v29 = vpop.xlane.xlu1 %620 }
 0x282   :  { %v635_v7 = vmul.f32 0.00390625, %v621_v29 }
 0x284   :  { %v639_v59 = vmul.f32 %v635_v7, %v635_v7 }
 0x285   :  { %v657_v49 = vpop.xlane.xlu0 %656 }
 0x286   :  { %v671_v27 = vmul.f32 0.00390625, %v657_v49 }
 0x287   :  { %v660_v1 = vpop.xlane.xlu1 %659 }
 0x288   :  { %v672_v3 = vmul.f32 0.00390625, %v660_v1  ;;  %v675_v57 = vmul.f32 %v671_v27, %v671_v27 }
 0x289   :  { %v624_v2 = vpop.xlane.xlu0 %623 }
 0x28a   :  { %v636_v20 = vmul.f32 0.00390625, %v624_v2  ;;  %v676_v62 = vmul.f32 %v672_v3, %v672_v3 }
 0x28b   :  { %v634_v22 = vpop.xlane.xlu1 %633 }
 0x28c   :  { %v640_v38 = vmul.f32 %v636_v20, %v636_v20  ;;  %v638_v24 = vmul.f32 0.00390625, %v634_v22 }
 0x28d   :  { %v631_v6 = vpop.xlane.xlu0 %630 }
 0x28e   :  { %v642_v25 = vsub.f32 %v638_v24, %v640_v38  ;;  %v637_v26 = vmul.f32 0.00390625, %v631_v6  ;;  %v643_v6 = vsub.f32 %v2022_v19, %v635_v7  ;;  %v681_v19 = vsub.f32 %v2036_v8, %v672_v3 }
 0x28f   :  { %v670_v28 = vpop.xlane.xlu1 %669 }
 0x290   :  { %v648_v0 = vadd.f32 1e-05, %v642_v25  ;;  %v641_v17 = vsub.f32 %v637_v26, %v639_v59  ;;  %v674_v30 = vmul.f32 0.00390625, %v670_v28  ;;  %v644_v25 = vsub.f32 %v2024_v33, %v635_v7 }
 0x291   :  { %v667_v16 = vpop.xlane.xlu0 %666  ;;  %v646_v59 = vsub.f32 %v2034_v18, %v636_v20 }
 0x292   :  { %v647_v23 = vadd.f32 1e-05, %v641_v17  ;;  %v678_v58 = vsub.f32 %v674_v30, %v676_v62  ;;  %v673_v2 = vmul.f32 0.00390625, %v667_v16  ;;  %1383 = vrsqrt.f32 %v648_v0 }
 0x293   :  { %v679_v17 = vsub.f32 %v2028_v60, %v671_v27  ;;  %v680_v30 = vsub.f32 %v2030_v61, %v671_v27 }
 0x294   :  { %1385 = vrsqrt.f32 %v647_v23  ;;  %v684_v29 = vadd.f32 1e-05, %v678_v58  ;;  %v677_v1 = vsub.f32 %v673_v2, %v675_v57  ;;  %v682_v23 = vsub.f32 %v2038_v11, %v672_v3 }
 0x295   :  { %v645_v2 = vsub.f32 %v2032_v21, %v636_v20 }
 0x296   :  { %v683_v22 = vadd.f32 1e-05, %v677_v1  ;;  %1387 = vrsqrt.f32 %v684_v29 }
 0x298   :  { %1389 = vrsqrt.f32 %v683_v22  ;;  %v1380_v22 = vld [vmem:[%s2618_s4 + $0x4] ss:$8 sps:$4 sm:$0xff]  }
 0x299   :  { %1359 = vmatprep.mubr.msk.bf16.mxu0 %vm529_vm0, %v1380_v22  ;;  %1360 = vmatprep.mubr.msk.bf16.mxu1 %vm529_vm0, %v1380_v22 }
 0x29c   :  { %v1384_v49 = vpop.eup %1383 }
 0x29d   :  { %v654_v0 = vmul.f32 %v1384_v49, %v646_v59  ;;  %v653_v11 = vmul.f32 %v1384_v49, %v645_v2 }
 0x29e   :  { %v1386_v26 = vpop.eup %1385 }
 0x29f   :  { %v651_v38 = vmul.f32 %v1386_v26, %v643_v6  ;;  %v652_v24 = vmul.f32 %v1386_v26, %v644_v25  ;;  %v2076_v7 = vmax.f32 %v654_v0, 0.0  ;;  %v2100_v29 = vmax.f32 %v653_v11, 0.0 }
 0x2a0   :  { %v1388_v28 = vpop.eup %1387 }
 0x2a1   :  { %v2066_v62 = vmax.f32 %v651_v38, 0.0  ;;  %v2068_v57 = vmax.f32 %v652_v24, 0.0  ;;  %v689_v33 = vmul.f32 %v1388_v28, %v681_v19  ;;  %v690_v27 = vmul.f32 %v1388_v28, %v682_v23  ;;  %v1129_v28 = vld [vmem:[%s2619_s5] sm:$0xff]  ;;  %v1399_v19 = vld [vmem:[#allocation6 + $0x30] sm:$0xff] }
 0x2a2   :  { %v1390_v58 = vpop.eup %1389 }
 0x2a3   :  { %v687_v16 = vmul.f32 %v1390_v58, %v679_v17  ;;  %703 = vrot.lane.b32.xlu1 %v2068_v57, %s1496_s22  ;;  %699 = vrot.lane.b32.xlu0 %v2066_v62, %s1496_s22  ;;  %v688_v60 = vmul.f32 %v1390_v58, %v680_v30  ;;  %v2085_v61 = vmax.f32 %v689_v33, 0.0  ;;  %v2094_v3 = vmax.f32 %v690_v27, 0.0  ;;  %v1130_v17 = vld [vmem:[%s2619_s5 + $0x8] sm:$0xff]  ;;  %v1400_v27 = vld [vmem:[#allocation6 + $0x10] sm:$0xff] }
 0x2a5   :  { %v2078_v18 = vmax.f32 %v687_v16, 0.0  ;;  %v2087_v8 = vmax.f32 %v688_v60, 0.0 }
 0x2a7   :  { %707 = vrot.lane.b32.xlu1 %v2078_v18, %s1496_s22  ;;  %705 = vrot.lane.b32.xlu0 %v2076_v7, %s1496_s22 }
 0x2ab   :  { %711 = vrot.lane.b32.xlu1 %v2087_v8, %s1496_s22  ;;  %709 = vrot.lane.b32.xlu0 %v2085_v61, %s1496_s22 }
 0x2af   :  { %747 = vrot.lane.b32.xlu1 %v2066_v62, %s1497_s1  ;;  %713 = vrot.lane.b32.xlu0 %v2094_v3, %s1496_s22 }
 0x2b3   :  { %751 = vrot.lane.b32.xlu1 %v2068_v57, %s1497_s1  ;;  %749 = vrot.lane.b32.xlu0 %v2100_v29, %s1497_s1 }
 0x2b7   :  { %755 = vrot.lane.b32.xlu1 %v2078_v18, %s1497_s1  ;;  %753 = vrot.lane.b32.xlu0 %v2076_v7, %s1497_s1 }
 0x2bb   :  { %759 = vrot.lane.b32.xlu1 %v2087_v8, %s1497_s1  ;;  %757 = vrot.lane.b32.xlu0 %v2085_v61, %s1497_s1 }
 0x2bf   :  { %795 = vrot.lane.b32.xlu1 %v2066_v62, %s1498_s23  ;;  %761 = vrot.lane.b32.xlu0 %v2094_v3, %s1497_s1 }
 0x2c3   :  { %799 = vrot.lane.b32.xlu1 %v2068_v57, %s1498_s23  ;;  %797 = vrot.lane.b32.xlu0 %v2100_v29, %s1498_s23 }
 0x2c7   :  { %803 = vrot.lane.b32.xlu1 %v2078_v18, %s1498_s23  ;;  %801 = vrot.lane.b32.xlu0 %v2076_v7, %s1498_s23 }
 0x2cb   :  { %807 = vrot.lane.b32.xlu1 %v2087_v8, %s1498_s23  ;;  %805 = vrot.lane.b32.xlu0 %v2085_v61, %s1498_s23 }
 0x2cf   :  { %843 = vrot.lane.b32.xlu1 %v2066_v62, %s1499_s24  ;;  %809 = vrot.lane.b32.xlu0 %v2094_v3, %s1498_s23 }
 0x2d3   :  { %847 = vrot.lane.b32.xlu1 %v2068_v57, %s1499_s24  ;;  %845 = vrot.lane.b32.xlu0 %v2100_v29, %s1499_s24 }
 0x2d7   :  { %851 = vrot.lane.b32.xlu1 %v2078_v18, %s1499_s24  ;;  %849 = vrot.lane.b32.xlu0 %v2076_v7, %s1499_s24 }
 0x2db   :  { %855 = vrot.lane.b32.xlu1 %v2087_v8, %s1499_s24  ;;  %853 = vrot.lane.b32.xlu0 %v2085_v61, %s1499_s24 }
 0x2df   :  { %899 = vrot.lane.b32.xlu1 %v2066_v62, %s1500_s25  ;;  %857 = vrot.lane.b32.xlu0 %v2094_v3, %s1499_s24 }
 0x2e3   :  { %903 = vrot.lane.b32.xlu1 %v2068_v57, %s1500_s25  ;;  %901 = vrot.lane.b32.xlu0 %v2100_v29, %s1500_s25 }
 0x2e7   :  { %907 = vrot.lane.b32.xlu1 %v2078_v18, %s1500_s25  ;;  %905 = vrot.lane.b32.xlu0 %v2076_v7, %s1500_s25 }
 0x2eb   :  { %911 = vrot.lane.b32.xlu1 %v2087_v8, %s1500_s25  ;;  %909 = vrot.lane.b32.xlu0 %v2085_v61, %s1500_s25 }
 0x2ef   :  { %947 = vrot.lane.b32.xlu1 %v2066_v62, %s1501_s26  ;;  %913 = vrot.lane.b32.xlu0 %v2094_v3, %s1500_s25 }
 0x2f3   :  { %951 = vrot.lane.b32.xlu1 %v2068_v57, %s1501_s26  ;;  %949 = vrot.lane.b32.xlu0 %v2100_v29, %s1501_s26 }
 0x2f7   :  { %955 = vrot.lane.b32.xlu1 %v2078_v18, %s1501_s26  ;;  %953 = vrot.lane.b32.xlu0 %v2076_v7, %s1501_s26 }
 0x2fb   :  { %959 = vrot.lane.b32.xlu1 %v2087_v8, %s1501_s26  ;;  %957 = vrot.lane.b32.xlu0 %v2085_v61, %s1501_s26 }
 0x2ff   :  { %701 = vrot.lane.b32.xlu1 %v2100_v29, %s1496_s22  ;;  %961 = vrot.lane.b32.xlu0 %v2094_v3, %s1501_s26 }
 0x303   :  { %995 = vrot.lane.b32.xlu1 %v2066_v62, %s1502_s27  ;;  %997 = vrot.lane.b32.xlu0 %v2100_v29, %s1502_s27 }
 0x307   :  { %999 = vrot.lane.b32.xlu1 %v2068_v57, %s1502_s27  ;;  %1001 = vrot.lane.b32.xlu0 %v2076_v7, %s1502_s27 }
 0x30b   :  { %1003 = vrot.lane.b32.xlu1 %v2078_v18, %s1502_s27  ;;  %1005 = vrot.lane.b32.xlu0 %v2085_v61, %s1502_s27 }
 0x30f   :  { %1007 = vrot.lane.b32.xlu1 %v2087_v8, %s1502_s27  ;;  %1009 = vrot.lane.b32.xlu0 %v2094_v3, %s1502_s27 }
 0x313   :  { %1043 = vrot.lane.b32.xlu1 %v2066_v62, %s1503_s28  ;;  %1045 = vrot.lane.b32.xlu0 %v2100_v29, %s1503_s28 }
 0x315   :  { %v700_v20 = vpop.permute.xlu0 %699  ;;  %v704_v21 = vpop.permute.xlu1 %703 }
 0x316   :  { %v2204_v1 = vsel %vm79_vm1, %v700_v20, %v704_v21 }
 0x317   :  { %1047 = vrot.lane.b32.xlu1 %v2068_v57, %s1503_s28  ;;  %1049 = vrot.lane.b32.xlu0 %v2076_v7, %s1503_s28 }
 0x319   :  { %v2213_v49 = vpop.permute.xlu0 %705  ;;  %v708_v6 = vpop.permute.xlu1 %707 }
 0x31a   :  { %v717_v0 = vsel %vm79_vm1, %v704_v21, %v708_v6 }
 0x31b   :  { %1051 = vrot.lane.b32.xlu1 %v2078_v18, %s1503_s28  ;;  %1053 = vrot.lane.b32.xlu0 %v2085_v61, %s1503_s28  ;;  %v733_v2 = vmul.f32 %v1400_v27, %v717_v0 }
 0x31d   :  { %v710_v25 = vpop.permute.xlu0 %709  ;;  %v712_v26 = vpop.permute.xlu1 %711 }
 0x31e   :  { %v2223_v59 = vsel %vm79_vm1, %v712_v26, %v700_v20  ;;  %v718_v38 = vsel %vm79_vm1, %v2213_v49, %v710_v25  ;;  %v715_v24 = vsel %vm79_vm1, %v708_v6, %v712_v26 }
 0x31f   :  { %1055 = vrot.lane.b32.xlu1 %v2087_v8, %s1503_s28  ;;  %1057 = vrot.lane.b32.xlu0 %v2094_v3, %s1503_s28  ;;  %v737_v16 = vmul.f32 %v1399_v19, %v718_v38  ;;  %v734_v60 = vmul.f32 %v715_v24, %v1731_v31 }
 0x321   :  { %v2242_v58 = vpop.permute.xlu0 %713  ;;  %v748_v30 = vpop.permute.xlu1 %747  ;;  %v741_v22 = vpack.c.bf16 %v737_v16, %v733_v2 }
 0x322   :  { %v716_v33 = vsel %vm79_vm1, %v710_v25, %v2242_v58 }
 0x323   :  { %v738_v23 = vmul.f32 %v716_v33, %v1733_v32  ;;  %1133 = vperm.xlu1 %1376, %v1129_v28   ;;  %1138 = vperm.xlu0 %1375, %v1130_v17  }
 0x325   :  { %v750_v11 = vpop.permute.xlu0 %749  ;;  %v752_v20 = vpop.permute.xlu1 %751  ;;  %v742_v21 = vpack.c.bf16 %v738_v23, %v734_v60 }
 0x326   :  { %v767_v6 = vsel %vm128_vm2, %v748_v30, %v752_v20 }
 0x327   :  { %1196 = vmatprep.subr.bf16.mxu1 %v742_v21  ;;  %v2254_v32 = vmul.f32 %v767_v6, %v1754_v53 }
 0x328   :  { %1197 = vmatpush1.bf16.msra.mxu1 %v741_v22 }
 0x329   :  { %v754_v26 = vpop.permute.xlu0 %753  ;;  %v756_v38 = vpop.permute.xlu1 %755 }
 0x32a   :  { %v768_v31 = vsel %vm128_vm2, %v750_v11, %v754_v26  ;;  %v765_v53 = vsel %vm128_vm2, %v752_v20, %v756_v38 }
 0x32b   :  { %v2257_v25 = vmul.f32 %v768_v31, %v1752_v52  ;;  %v781_v22 = vmul.f32 %v765_v53, %v1766_v10 }
 0x32d   :  { %v758_v24 = vpop.permute.xlu0 %757  ;;  %v760_v28 = vpop.permute.xlu1 %759  ;;  %v788_v17 = vpack.c.bf16 %v2257_v25, %v2254_v32  ;;  %v1404_v25 = vld [vmem:[#allocation6 + $0xc8] sm:$0xff] }
 0x32e   :  { %v769_v0 = vsel %vm128_vm2, %v760_v28, %v748_v30  ;;  %v766_v19 = vsel %vm128_vm2, %v754_v26, %v758_v24  ;;  %v763_v16 = vsel %vm128_vm2, %v756_v38, %v760_v28 }
 0x32f   :  { %v785_v60 = vmul.f32 %v766_v19, %v1762_v63  ;;  %v2275_v30 = vmul.f32 %v769_v0, %v1774_v14  ;;  %v782_v2 = vmul.f32 %v763_v16, %v1776_v15 }
 0x331   :  { %v762_v33 = vpop.permute.xlu0 %761  ;;  %v796_v52 = vpop.permute.xlu1 %795  ;;  %v789_v31 = vpack.c.bf16 %v785_v60, %v781_v22 }
 0x332   :  { %v764_v23 = vsel %vm128_vm2, %v758_v24, %v762_v33  ;;  %v770_v27 = vsel %vm128_vm2, %v762_v33, %v750_v11 }
 0x333   :  { %v2279_v21 = vmul.f32 %v770_v27, %v1770_v12  ;;  %v786_v20 = vmul.f32 %v764_v23, %v1772_v13 }
 0x335   :  { %v787_v63 = vpack.c.bf16 %v2279_v21, %v2275_v30  ;;  %v798_v6 = vpop.permute.xlu0 %797  ;;  %v800_v26 = vpop.permute.xlu1 %799  ;;  %v790_v38 = vpack.c.bf16 %v786_v20, %v782_v2  ;;  %v892_v30 = vpack.c.bf16 %v2076_v7, %v2068_v57 }
 0x336   :  { %v815_v14 = vsel %vm178_vm3, %v796_v52, %v800_v26 }
 0x337   :  { %1198 = vmatprep.subr.bf16.mxu1 %v790_v38  ;;  %v2290_v13 = vmul.f32 %v815_v14, %v1795_v36 }
 0x338   :  { %1199 = vmatpush1.bf16.msra.mxu1 %v789_v31 }
 0x339   :  { %v802_v15 = vpop.permute.xlu0 %801  ;;  %v804_v11 = vpop.permute.xlu1 %803 }
 0x33a   :  { %v816_v12 = vsel %vm178_vm3, %v798_v6, %v802_v15  ;;  %v813_v36 = vsel %vm178_vm3, %v800_v26, %v804_v11 }
 0x33b   :  { %v2293_v10 = vmul.f32 %v816_v12, %v1793_v35  ;;  %v829_v26 = vmul.f32 %v813_v36, %v1807_v48 }
 0x33d   :  { %v806_v24 = vpop.permute.xlu0 %805  ;;  %v808_v28 = vpop.permute.xlu1 %807  ;;  %v836_v0 = vpack.c.bf16 %v2293_v10, %v2290_v13  ;;  %v1407_v10 = vld [vmem:[#allocation6 + $0x168] sm:$0xff] }
 0x33e   :  { %v814_v19 = vsel %vm178_vm3, %v802_v15, %v806_v24  ;;  %v811_v16 = vsel %vm178_vm3, %v804_v11, %v808_v28  ;;  %v817_v53 = vsel %vm178_vm3, %v808_v28, %v796_v52 }
 0x33f   :  { %v833_v60 = vmul.f32 %v814_v19, %v1803_v46  ;;  %v2313_v2 = vmul.f32 %v817_v53, %v1815_v54  ;;  %v830_v20 = vmul.f32 %v811_v16, %v1817_v55 }
 0x341   :  { %v810_v33 = vpop.permute.xlu0 %809  ;;  %v2305_v35 = vpop.permute.xlu1 %843  ;;  %v837_v14 = vpack.c.bf16 %v833_v60, %v829_v26 }
 0x342   :  { %v812_v23 = vsel %vm178_vm3, %v806_v24, %v810_v33  ;;  %v818_v27 = vsel %vm178_vm3, %v810_v33, %v798_v6 }
 0x343   :  { %v2317_v52 = vmul.f32 %v818_v27, %v1811_v50  ;;  %v834_v22 = vmul.f32 %v812_v23, %v1813_v51 }
 0x345   :  { %v835_v46 = vpack.c.bf16 %v2317_v52, %v2313_v2  ;;  %v2323_v38 = vpop.permute.xlu0 %845  ;;  %v2325_v31 = vpop.permute.xlu1 %847  ;;  %v838_v6 = vpack.c.bf16 %v834_v22, %v830_v20 }
 0x347   :  { %1200 = vmatprep.subr.bf16.mxu1 %v838_v6 }
 0x348   :  { %1201 = vmatpush1.bf16.msra.mxu1 %v837_v14 }
 0x349   :  { %v2327_v54 = vpop.permute.xlu0 %849  ;;  %v852_v55 = vpop.permute.xlu1 %851 }
 0x34a   :  { %v861_v11 = vsel %vm228_vm4, %v2325_v31, %v852_v55 }
 0x34b   :  { %v877_v36 = vmul.f32 %v861_v11, %v1842_v41 }
 0x34d   :  { %v854_v50 = vpop.permute.xlu0 %853  ;;  %v2329_v15 = vpop.permute.xlu1 %855 }
 0x34e   :  { %v862_v48 = vsel %vm228_vm4, %v2327_v54, %v854_v50  ;;  %v859_v51 = vsel %vm228_vm4, %v852_v55, %v2329_v15  ;;  %v865_v32 = vsel %vm228_vm4, %v2329_v15, %v2305_v35 }
 0x34f   :  { %v881_v28 = vmul.f32 %v862_v48, %v1838_v39  ;;  %v878_v16 = vmul.f32 %v859_v51, %v1848_v47  ;;  %v894_v39 = vpack.c.bf16 %v2094_v3, %v2087_v8 }
 0x351   :  { %v2340_v12 = vpop.permute.xlu0 %857  ;;  %v2342_v24 = vpop.permute.xlu1 %899  ;;  %v885_v27 = vpack.c.bf16 %v881_v28, %v877_v36 }
 0x352   :  { %v860_v19 = vsel %vm228_vm4, %v854_v50, %v2340_v12 }
 0x353   :  { %v882_v53 = vmul.f32 %v860_v19, %v1846_v44  ;;  %v893_v44 = vpack.c.bf16 %v2085_v61, %v2078_v18 }
 0x355   :  { %v2351_v33 = vpop.permute.xlu0 %901  ;;  %v2353_v60 = vpop.permute.xlu1 %903  ;;  %v886_v23 = vpack.c.bf16 %v882_v53, %v878_v16 }
 0x357   :  { %1202 = vmatprep.subr.bf16.mxu1 %v886_v23  ;;  %v728_v23 = vld [vmem:[#allocation6 + $0x28] sm:$0xff] }
 0x358   :  { %1203 = vmatpush1.bf16.msra.mxu1 %v885_v27  ;;  %v1401_v27 = vld [vmem:[#allocation6 + $0x8] sm:$0xff] }
 0x359   :  { %v2357_v20 = vpop.permute.xlu0 %905  ;;  %1204 = vmatprep.subr.bf16.mxu1 %v894_v39  ;;  %v2359_v22 = vpop.permute.xlu1 %907  ;;  %v732_v39 = vmul.f32 %v1401_v27, %v2204_v1  ;;  %v1405_v27 = vld [vmem:[#allocation6 + $0xe0] sm:$0xff] }
 0x35a   :  { %v917_v13 = vsel %vm286_vm5, %v2353_v60, %v2359_v22 }
 0x35c   :  { %1205 = vmatpush1.bf16.msra.mxu1 %v893_v44  ;;  %v1402_v44 = vld [vmem:[#allocation6] sm:$0xff] }
 0x35d   :  { %v2363_v41 = vpop.permute.xlu0 %909  ;;  %v912_v47 = vpop.permute.xlu1 %911 }
 0x35e   :  { %v915_v26 = vsel %vm286_vm5, %v2359_v22, %v912_v47  ;;  %v921_v8 = vsel %vm286_vm5, %v912_v47, %v2342_v24  ;;  %v731_v47 = vmul.f32 %v1402_v44, %v2223_v59 }
 0x35f   :  { %v933_v61 = vmul.f32 %v915_v26, %v1883_v43  ;;  %v934_v55 = vmul.f32 %v921_v8, %v1885_v45  ;;  %v727_v45 = vld [vmem:[#allocation6 + $0x20] sm:$0xff] }
 0x361   :  { %v914_v3 = vpop.permute.xlu0 %913  ;;  %v2371_v6 = vpop.permute.xlu1 %947 }
 0x362   :  { %v916_v14 = vsel %vm286_vm5, %v2363_v41, %v914_v3  ;;  %v922_v18 = vsel %vm286_vm5, %v914_v3, %v2351_v33 }
 0x363   :  { %v937_v50 = vmul.f32 %v916_v14, %v1879_v40  ;;  %v938_v48 = vmul.f32 %v922_v18, %v1881_v42 }
 0x365   :  { %v941_v51 = vpack.c.bf16 %v937_v50, %v933_v61  ;;  %v2383_v11 = vpop.permute.xlu0 %949  ;;  %v2385_v28 = vpop.permute.xlu1 %951  ;;  %v942_v19 = vpack.c.bf16 %v938_v48, %v934_v55 }
 0x367   :  { %1206 = vmatprep.subr.bf16.mxu1 %v942_v19 }
 0x368   :  { %1207 = vmatpush1.bf16.msra.mxu1 %v941_v51 }
 0x369   :  { %v2387_v16 = vpop.permute.xlu0 %953  ;;  %v2389_v53 = vpop.permute.xlu1 %955 }
 0x36d   :  { %v2391_v36 = vpop.permute.xlu0 %957  ;;  %v960_v43 = vpop.permute.xlu1 %959 }
 0x36e   :  { %v963_v40 = vsel %vm336_vm6, %v2389_v53, %v960_v43  ;;  %v969_v42 = vsel %vm336_vm6, %v960_v43, %v2371_v6 }
 0x36f   :  { %v981_v26 = vmul.f32 %v963_v40, %v1921_v5  ;;  %v982_v8 = vmul.f32 %v969_v42, %v1923_v37 }
 0x371   :  { %v962_v3 = vpop.permute.xlu0 %961  ;;  %v702_v14 = vpop.permute.xlu1 %701 }
 0x372   :  { %v964_v18 = vsel %vm336_vm6, %v2391_v36, %v962_v3  ;;  %v970_v61 = vsel %vm336_vm6, %v962_v3, %v2383_v11  ;;  %v720_v1 = vsel %vm79_vm1, %v702_v14, %v2213_v49  ;;  %v722_v5 = vsel %vm79_vm1, %v2242_v58, %v702_v14 }
 0x373   :  { %v985_v37 = vmul.f32 %v964_v18, %v1917_v34  ;;  %v986_v59 = vmul.f32 %v970_v61, %v1919_v4  ;;  %v735_v55 = vmul.f32 %v727_v45, %v722_v5  ;;  %v736_v50 = vmul.f32 %v728_v23, %v720_v1  ;;  %v1403_v45 = vld [vmem:[#allocation6 + $0xe8] sm:$0xff] }
 0x374   :  { %v864_v49 = vsel %vm228_vm4, %v2323_v38, %v2327_v54  ;;  %v863_v58 = vsel %vm228_vm4, %v2305_v35, %v2325_v31  ;;  %v866_v54 = vsel %vm228_vm4, %v2340_v12, %v2323_v38  ;;  %v918_v12 = vsel %vm286_vm5, %v2357_v20, %v2363_v41  ;;  %v1406_v35 = vld [vmem:[#allocation6 + $0xc0] sm:$0xff]  ;;  %v1408_v61 = vld [vmem:[#allocation6 + $0x148] sm:$0xff] }
 0x375   :  { %v989_v48 = vpack.c.bf16 %v985_v37, %v981_v26  ;;  %v739_v51 = vpack.c.bf16 %v735_v55, %v731_v47  ;;  %v2417_v19 = vpop.permute.xlu0 %997  ;;  %v2419_v43 = vpop.permute.xlu1 %995  ;;  %v740_v40 = vpack.c.bf16 %v736_v50, %v732_v39  ;;  %v990_v42 = vpack.c.bf16 %v986_v59, %v982_v8  ;;  %v2658_v47 = vld [vmem:[#allocation20_spill] sm:$0xff]  ;;  %v2659_v8 = vld [vmem:[#allocation21_spill] sm:$0xff] }
 0x376   :  { %v880_v23 = vmul.f32 %v1403_v45, %v864_v49  ;;  %v879_v31 = vmul.f32 %v1405_v27, %v866_v54  ;;  %v875_v15 = vmul.f32 %v1406_v35, %v865_v32  ;;  %v919_v14 = vsel %vm286_vm5, %v2342_v24, %v2353_v60  ;;  %v1409_v55 = vld [vmem:[#allocation6 + $0x160] sm:$0xff]  ;;  %v2663_v27 = vld [vmem:[#allocation17_spill] sm:$0xff] }
 0x377   :  { %1153 = vmatprep.subr.bf16.mxu0 %v740_v40  ;;  %1208 = vmatprep.subr.bf16.mxu1 %v990_v42  ;;  %v966_v18 = vsel %vm336_vm6, %v2387_v16, %v2391_v36  ;;  %v932_v1 = vmul.f32 %v1408_v61, %v917_v13  ;;  %v968_v24 = vsel %vm336_vm6, %v2383_v11, %v2387_v16  ;;  %v2660_v40 = vld [vmem:[#allocation13_spill] sm:$0xff]  ;;  %v2671_v61 = vld [vmem:[#allocation26_spill] sm:$0xff] }
 0x378   :  { %1154 = vmatpush1.bf16.msra.mxu0 %v739_v51  ;;  %1209 = vmatpush1.bf16.msra.mxu1 %v989_v48  ;;  %v883_v21 = vpack.c.bf16 %v879_v31, %v875_v15  ;;  %v965_v60 = vsel %vm336_vm6, %v2385_v28, %v2389_v53  ;;  %v891_v36 = vpack.c.bf16 %v2100_v29, %v2066_v62  ;;  %v1410_v48 = vld [vmem:[#allocation6 + $0x140] sm:$0xff]  ;;  %v2662_v53 = vld [vmem:[#allocation14_spill] sm:$0xff]  ;;  %v2665_v15 = vld [vmem:[#allocation15_spill] sm:$0xff] }
 0x379   :  { %v2425_v34 = vpop.permute.xlu0 %1001  ;;  %1155 = vmatprep.subr.bf16.mxu0 %v788_v17  ;;  %v2430_v4 = vpop.permute.xlu1 %999  ;;  %v876_v17 = vmul.f32 %v1404_v25, %v863_v58  ;;  %v931_v51 = vmul.f32 %v1410_v48, %v919_v14  ;;  %v984_v42 = vmul.f32 %v966_v18, %v2660_v40  ;;  %v967_v58 = vsel %vm336_vm6, %v2371_v6, %v2385_v28  ;;  %v2661_v62 = vld [vmem:[#allocation12_spill] sm:$0xff] }
 0x37a   :  { %v983_v29 = vmul.f32 %v968_v24, %v2661_v62  ;;  %v980_v54 = vmul.f32 %v965_v60, %v2662_v53  ;;  %v1016_v6 = vsel %vm386_vm7, %v2417_v19, %v2425_v34  ;;  %v1015_v28 = vsel %vm386_vm7, %v2419_v43, %v2430_v4  ;;  %v1411_v25 = vld [vmem:[#allocation6 + $0x180] sm:$0xff]  ;;  %v2674_v24 = vld [vmem:[#allocation29_spill] sm:$0xff] }
 0x37b   :  { %v884_v44 = vpack.c.bf16 %v880_v23, %v876_v17  ;;  %v979_v17 = vmul.f32 %v1411_v25, %v967_v58 }
 0x37c   :  { %1156 = vmatpush1.bf16.msra.mxu0 %v787_v63  ;;  %v920_v63 = vsel %vm286_vm5, %v2351_v33, %v2357_v20  ;;  %v2657_v20 = vld [vmem:[#allocation19_spill] sm:$0xff] }
 0x37d   :  { %v1006_v39 = vpop.permute.xlu0 %1005  ;;  %1157 = vmatprep.subr.bf16.mxu0 %v836_v0  ;;  %v1004_v38 = vpop.permute.xlu1 %1003  ;;  %v936_v0 = vmul.f32 %v1407_v10, %v918_v12  ;;  %v935_v50 = vmul.f32 %v1409_v55, %v920_v63  ;;  %v988_v12 = vpack.c.bf16 %v984_v42, %v980_v54  ;;  %v987_v35 = vpack.c.bf16 %v983_v29, %v979_v17  ;;  %v2667_v10 = vld [vmem:[#allocation24_spill] sm:$0xff] }
 0x37e   :  { %v1014_v11 = vsel %vm386_vm7, %v2425_v34, %v1006_v39  ;;  %v1013_v16 = vsel %vm386_vm7, %v2430_v4, %v1004_v38  ;;  %v2673_v55 = vld [vmem:[#allocation28_spill] sm:$0xff] }
 0x37f   :  { %v940_v49 = vpack.c.bf16 %v936_v0, %v932_v1  ;;  %v939_v32 = vpack.c.bf16 %v935_v50, %v931_v51  ;;  %v1032_v31 = vmul.f32 %v1014_v11, %v2663_v27 }
 0x380   :  { %1158 = vmatpush1.bf16.msra.mxu0 %v835_v46 }
 0x381   :  { %v1010_v41 = vpop.permute.xlu0 %1009  ;;  %1159 = vmatprep.subr.bf16.mxu0 %v884_v44  ;;  %v1008_v2 = vpop.permute.xlu1 %1007  ;;  %v1031_v44 = vmul.f32 %v1016_v6, %v2665_v15 }
 0x382   :  { %v1012_v52 = vsel %vm386_vm7, %v1006_v39, %v1010_v41  ;;  %v1018_v57 = vsel %vm386_vm7, %v1010_v41, %v2417_v19  ;;  %v1011_v7 = vsel %vm386_vm7, %v1004_v38, %v1008_v2  ;;  %v1017_v46 = vsel %vm386_vm7, %v1008_v2, %v2419_v43  ;;  %v2664_v39 = vld [vmem:[#allocation18_spill] sm:$0xff]  ;;  %v2668_v41 = vld [vmem:[#allocation25_spill] sm:$0xff] }
 0x383   :  { %v1033_v33 = vmul.f32 %v1012_v52, %v1958_v56  ;;  %v1034_v22 = vmul.f32 %v1018_v57, %v2657_v20  ;;  %v1029_v26 = vmul.f32 %v1011_v7, %v2658_v47  ;;  %v1030_v3 = vmul.f32 %v1017_v46, %v2659_v8  ;;  %v2669_v7 = vld [vmem:[#allocation22_spill] sm:$0xff] }
 0x384   :  { %1160 = vmatpush1.bf16.msra.mxu0 %v883_v21  ;;  %v1028_v38 = vmul.f32 %v1013_v16, %v2664_v39 }
 0x385   :  { %v1037_v56 = vpack.c.bf16 %v1033_v33, %v1029_v26  ;;  %v1046_v5 = vpop.permute.xlu0 %1045  ;;  %1161 = vmatprep.subr.bf16.mxu0 %v892_v30  ;;  %v1044_v37 = vpop.permute.xlu1 %1043  ;;  %v1038_v59 = vpack.c.bf16 %v1034_v22, %v1030_v3  ;;  %v2666_v30 = vld [vmem:[#allocation16_spill] sm:$0xff]  ;;  %v2670_v33 = vld [vmem:[#allocation23_spill] sm:$0xff] }
 0x386   :  { %v1027_v21 = vmul.f32 %v1015_v28, %v2666_v30  ;;  %v1036_v52 = vpack.c.bf16 %v1032_v31, %v1028_v38 }
 0x387   :  { %1210 = vmatprep.subr.bf16.mxu1 %v1038_v59 }
 0x388   :  { %1162 = vmatpush1.bf16.msra.mxu0 %v891_v36  ;;  %1211 = vmatpush1.bf16.msra.mxu1 %v1037_v56  ;;  %v1035_v57 = vpack.c.bf16 %v1031_v44, %v1027_v21  ;;  %v2672_v56 = vld [vmem:[#allocation27_spill] sm:$0xff] }
 0x389   :  { %v1050_v45 = vpop.permute.xlu0 %1049  ;;  %1163 = vmatprep.subr.bf16.mxu0 %v940_v49  ;;  %v1048_v23 = vpop.permute.xlu1 %1047 }
 0x38a   :  { %v1064_v34 = vsel %vm436_vm8, %v1046_v5, %v1050_v45  ;;  %v1063_v43 = vsel %vm436_vm8, %v1044_v37, %v1048_v23 }
 0x38b   :  { %v1079_v46 = vmul.f32 %v1064_v34, %v2669_v7  ;;  %v1075_v20 = vmul.f32 %v1063_v43, %v2670_v33 }
 0x38c   :  { %1164 = vmatpush1.bf16.msra.mxu0 %v939_v32 }
 0x38d   :  { %v1054_v63 = vpop.permute.xlu0 %1053  ;;  %1165 = vmatprep.subr.bf16.mxu0 %v988_v12  ;;  %v1052_v19 = vpop.permute.xlu1 %1051  ;;  %v1083_v51 = vpack.c.bf16 %v1079_v46, %v1075_v20 }
 0x38e   :  { %v1062_v4 = vsel %vm436_vm8, %v1050_v45, %v1054_v63  ;;  %v1061_v13 = vsel %vm436_vm8, %v1048_v23, %v1052_v19 }
 0x38f   :  { %v1080_v0 = vmul.f32 %v1062_v4, %v2667_v10  ;;  %v1076_v2 = vmul.f32 %v1061_v13, %v2668_v41 }
 0x390   :  { %1166 = vmatpush1.bf16.msra.mxu0 %v987_v35 }
 0x391   :  { %v1058_v22 = vpop.permute.xlu0 %1057  ;;  %1167 = vmatprep.subr.bf16.mxu0 %v1036_v52  ;;  %v1056_v47 = vpop.permute.xlu1 %1055  ;;  %v1084_v26 = vpack.c.bf16 %v1080_v0, %v1076_v2 }
 0x392   :  { %v1060_v8 = vsel %vm436_vm8, %v1054_v63, %v1058_v22  ;;  %v1066_v3 = vsel %vm436_vm8, %v1058_v22, %v1046_v5  ;;  %v1059_v14 = vsel %vm436_vm8, %v1052_v19, %v1056_v47  ;;  %v1065_v18 = vsel %vm436_vm8, %v1056_v47, %v1044_v37  ;;  %v1382_v5 = vld [vmem:[%s2618_s4] ss:$8 sps:$4 sm:$0xff]   ;;  %s1505_s4 = smov [#allocation8]  }
 0x393   :  { %v1081_v1 = vmul.f32 %v1060_v8, %v2671_v61  ;;  %v1082_v59 = vmul.f32 %v1066_v3, %v2672_v56  ;;  %v1077_v50 = vmul.f32 %v1059_v14, %v2673_v55  ;;  %v1078_v60 = vmul.f32 %v1065_v18, %v2674_v24  ;;  %s1340_s20 = sshll.u32 %s1505_s4, 4  ;;  %s1341_s20 = int_to_ptr.vmem [resolvable:$true] %s1340_s20 }
 0x394   :  { %1168 = vmatpush1.bf16.msra.mxu0 %v1035_v57  ;;  %s1464_s0 = scalar_lea.vmem %s1341_s20, 1024  ;;  %p1469_p3 = scmp.lt.s32.totalorder %s1341_s20, %s1341_s20 }
 0x395   :  { %v1085_v36 = vpack.c.bf16 %v1081_v1, %v1077_v50  ;;  %1169 = vmatprep.subr.bf16.mxu0 %v1084_v26  ;;  %v1086_v48 = vpack.c.bf16 %v1082_v59, %v1078_v60  ;;  %p1465_p2 = scmp.ne.s32.totalorder %s1341_s20, %s1464_s0  ;;  %p1470_p4 = scmp.lt.s32.totalorder %s1464_s0, %s1464_s0 }
 0x397   :  { %1212 = vmatprep.subr.bf16.mxu1 %v1086_v48  ;;  %p1471_p5 = por %p1470_p4, %p1469_p3 }
 0x398   :  { %1170 = vmatpush1.bf16.msra.mxu0 %v1083_v51  ;;  %1213 = vmatpush1.bf16.msra.mxu1 %v1085_v36 }
 0x399   :  { %p1472_p6 = pnand %p1471_p5, %p1465_p2 }
 0x39b   :  { %1186 = vmatmul.mubr.bf16.vlgmr.msra.gmra.mrb[4].mxu0 %v1382_v5  ;;  %1229 = vmatmul.mubr.bf16.vlgmr.msra.gmra.mrb[4].mxu1 %v1382_v5 }
 0x3a2   :  { %v1139_v9 = vpop.permute.xlu0 %1138  ;;  %v1134_v37 = vpop.permute.xlu1 %1133 }
 0x46e   :  { %v1187_v40 = vpop.f32.mrb[4].mxu0  ;;  %v1230_v42 = vpop.f32.mrb[4].mxu1 }
 0x46f   :  { %v2551_v49 = vadd.f32 %v1187_v40, %v1134_v37  ;;  %v2553_v58 = vadd.f32 %v1230_v42, %v1134_v37  ;;  %v1189_v11 = vpop.f32.mrb[5].mxu0  ;;  %v1232_v16 = vpop.f32.mrb[5].mxu1 }
 0x470   :  { %v2555_v62 = vadd.f32 %v1189_v11, %v1134_v37  ;;  %v2557_v29 = vadd.f32 %v1232_v16, %v1134_v37  ;;  %v1191_v53 = vpop.f32.mrb[6].mxu0  ;;  %v1234_v54 = vpop.f32.mrb[6].mxu1 }
 0x471   :  { %v1193_v45 = vpop.f32.mrb[7].mxu0  ;;  %v1236_v23 = vpop.f32.mrb[7].mxu1  ;;  %v2559_v32 = vadd.f32 %v1191_v53, %v1139_v9  ;;  %v2561_v6 = vadd.f32 %v1234_v54, %v1139_v9  ;;  %v1245_v31 = vmul.f32 %v2551_v49, %v2551_v49  ;;  %v1281_v44 = vmul.f32 %v2553_v58, %v2553_v58 }
 0x472   :  { %v2563_v28 = vadd.f32 %v1193_v45, %v1139_v9  ;;  %v2565_v25 = vadd.f32 %v1236_v23, %v1139_v9  ;;  %v1275_v17 = vadd.f32 %v2557_v29, %v2553_v58  ;;  %v1239_v27 = vadd.f32 %v2555_v62, %v2551_v49 }
 0x473   :  { %v1246_v39 = vmul.f32 %v2555_v62, %v2555_v62  ;;  %v1247_v38 = vmul.f32 %v2559_v32, %v2559_v32  ;;  %v1282_v30 = vmul.f32 %v2557_v29, %v2557_v29  ;;  %v1283_v21 = vmul.f32 %v2561_v6, %v2561_v6 }
 0x474   :  { %1276 = vadd.xlane.f32.xlu0 %v1275_v17  ;;  %1240 = vadd.xlane.f32.xlu1 %v1239_v27  ;;  %v1248_v12 = vmul.f32 %v2563_v28, %v2563_v28  ;;  %v1242_v35 = vadd.f32 %v2563_v28, %v2559_v32  ;;  %v1278_v15 = vadd.f32 %v2565_v25, %v2561_v6  ;;  %v1412_v17 = vld [vmem:[#allocation3] sm:$0xff] }
 0x475   :  { %v1284_v63 = vmul.f32 %v2565_v25, %v2565_v25  ;;  %v1249_v19 = vadd.f32 %v1246_v39, %v1245_v31  ;;  %v1285_v43 = vadd.f32 %v1282_v30, %v1281_v44  ;;  %v1413_v31 = vld [vmem:[#allocation3 + $0x8] sm:$0xff] }
 0x476   :  { %v1252_v34 = vadd.f32 %v1248_v12, %v1247_v38  ;;  %v1414_v38 = vld [vmem:[#allocation3 + $0x20] sm:$0xff]  ;;  %v1415_v12 = vld [vmem:[#allocation3 + $0x28] sm:$0xff] }
 0x477   :  { %v1288_v4 = vadd.f32 %v1284_v63, %v1283_v21 }
 0x478   :  { %1243 = vadd.xlane.f32.xlu0 %v1242_v35  ;;  %1279 = vadd.xlane.f32.xlu1 %v1278_v15 }
 0x47c   :  { %1250 = vadd.xlane.f32.xlu0 %v1249_v19  ;;  %1253 = vadd.xlane.f32.xlu1 %v1252_v34 }
 0x480   :  { %1286 = vadd.xlane.f32.xlu0 %v1285_v43  ;;  %1289 = vadd.xlane.f32.xlu1 %v1288_v4  ;;  %v1416_v43 = vld [vmem:[#allocation3 + $0x10] sm:$0xff] }
 0x501   :  { %v1277_v13 = vpop.xlane.xlu0 %1276  ;;  %v1241_v10 = vpop.xlane.xlu1 %1240 }
 0x502   :  { %v1255_v2 = vmul.f32 0.00390625, %v1241_v10  ;;  %v1291_v57 = vmul.f32 0.00390625, %v1277_v13 }
 0x504   :  { %v1259_v22 = vmul.f32 %v1255_v2, %v1255_v2  ;;  %v1295_v14 = vmul.f32 %v1291_v57, %v1291_v57  ;;  %v1263_v51 = vsub.f32 %v2551_v49, %v1255_v2  ;;  %v1264_v5 = vsub.f32 %v2555_v62, %v1255_v2 }
 0x505   :  { %v1244_v0 = vpop.xlane.xlu0 %1243  ;;  %v1280_v41 = vpop.xlane.xlu1 %1279  ;;  %v1299_v45 = vsub.f32 %v2553_v58, %v1291_v57  ;;  %v1300_v23 = vsub.f32 %v2557_v29, %v1291_v57 }
 0x506   :  { %v1256_v52 = vmul.f32 0.00390625, %v1244_v0  ;;  %v1292_v7 = vmul.f32 0.00390625, %v1280_v41  ;;  %v1419_v0 = vld [vmem:[#allocation3 + $0x38] sm:$0xff] }
 0x508   :  { %v1260_v47 = vmul.f32 %v1256_v52, %v1256_v52  ;;  %v1296_v61 = vmul.f32 %v1292_v7, %v1292_v7  ;;  %v1265_v37 = vsub.f32 %v2559_v32, %v1256_v52  ;;  %v1266_v40 = vsub.f32 %v2563_v28, %v1256_v52 }
 0x509   :  { %v1251_v46 = vpop.xlane.xlu0 %1250  ;;  %v1254_v33 = vpop.xlane.xlu1 %1253  ;;  %v1301_v62 = vsub.f32 %v2561_v6, %v1292_v7  ;;  %v1302_v32 = vsub.f32 %v2565_v25, %v1292_v7  ;;  %v1417_v6 = vld [vmem:[#allocation3 + $0x18] sm:$0xff]  ;;  %v1418_v25 = vld [vmem:[#allocation3 + $0x30] sm:$0xff] }
 0x50a   :  { %v1257_v20 = vmul.f32 0.00390625, %v1251_v46  ;;  %v1258_v26 = vmul.f32 0.00390625, %v1254_v33 }
 0x50c   :  { %v1261_v8 = vsub.f32 %v1257_v20, %v1259_v22  ;;  %v1262_v3 = vsub.f32 %v1258_v26, %v1260_v47 }
 0x50d   :  { %v1287_v18 = vpop.xlane.xlu0 %1286  ;;  %v1290_v1 = vpop.xlane.xlu1 %1289 }
 0x50e   :  { %v1267_v56 = vadd.f32 1e-05, %v1261_v8  ;;  %v1268_v59 = vadd.f32 1e-05, %v1262_v3  ;;  %v1293_v55 = vmul.f32 0.00390625, %v1287_v18  ;;  %v1294_v50 = vmul.f32 0.00390625, %v1290_v1 }
 0x510   :  { %1391 = vrsqrt.f32 %v1267_v56  ;;  %v1297_v24 = vsub.f32 %v1293_v55, %v1295_v14  ;;  %v1298_v60 = vsub.f32 %v1294_v50, %v1296_v61 }
 0x511   :  { %1393 = vrsqrt.f32 %v1268_v59 }
 0x512   :  { %v1303_v36 = vadd.f32 1e-05, %v1297_v24  ;;  %v1304_v48 = vadd.f32 1e-05, %v1298_v60 }
 0x514   :  { %1395 = vrsqrt.f32 %v1303_v36 }
 0x515   :  { %1397 = vrsqrt.f32 %v1304_v48 }
 0x51a   :  { %v1392_v9 = vpop.eup %1391 }
 0x51b   :  { %v1394_v42 = vpop.eup %1393  ;;  %v1271_v11 = vmul.f32 %v1392_v9, %v1263_v51  ;;  %v1272_v16 = vmul.f32 %v1392_v9, %v1264_v5 }
 0x51c   :  { %v1273_v53 = vmul.f32 %v1394_v42, %v1265_v37  ;;  %v1274_v54 = vmul.f32 %v1394_v42, %v1266_v40 }
 0x51d   :  { %v1311_v27 = vadd.f32 %v1412_v17, %v1271_v11  ;;  %v1312_v49 = vadd.f32 %v1413_v31, %v1272_v16 }
 0x51e   :  { %v1396_v39 = vpop.eup %1395  ;;  %v1315_v28 = vadd.f32 %v1414_v38, %v1273_v53  ;;  %v1316_v35 = vadd.f32 %v1415_v12, %v1274_v54 }
 0x51f   :  { %v1398_v15 = vpop.eup %1397  ;;  %v1319_v44 = vmax.f32 %v1311_v27, 0.0  ;;  %v1320_v30 = vmax.f32 %v1312_v49, 0.0  ;;  %v1307_v21 = vmul.f32 %v1396_v39, %v1299_v45  ;;  %v1308_v58 = vmul.f32 %v1396_v39, %v1300_v23 }
 0x520   :  { %v1323_v63 = vmax.f32 %v1315_v28, 0.0  ;;  %v1324_v29 = vmax.f32 %v1316_v35, 0.0  ;;  %v1309_v19 = vmul.f32 %v1398_v15, %v1301_v62  ;;  %v1310_v34 = vmul.f32 %v1398_v15, %v1302_v32 }
 0x521   :  { %1327 = vst [vmem:[#allocation8] sm:$0xff] %v1319_v44  ;;  %1328 = vst [vmem:[#allocation8 + $0x8] sm:$0xff] %v1320_v30  ;;  %v1313_v4 = vadd.f32 %v1416_v43, %v1307_v21  ;;  %v1314_v13 = vadd.f32 %v1417_v6, %v1308_v58 }
 0x522   :  { %1331 = vst [vmem:[#allocation8 + $0x20] sm:$0xff] %v1323_v63  ;;  %1332 = vst [vmem:[#allocation8 + $0x28] sm:$0xff] %v1324_v29  ;;  %v1317_v10 = vadd.f32 %v1418_v25, %v1309_v19  ;;  %v1318_v41 = vadd.f32 %v1419_v0, %v1310_v34 }
 0x523   :  { %v1321_v2 = vmax.f32 %v1313_v4, 0.0  ;;  %v1322_v52 = vmax.f32 %v1314_v13, 0.0 }
 0x524   :  { %v1325_v57 = vmax.f32 %v1317_v10, 0.0  ;;  %v1326_v7 = vmax.f32 %v1318_v41, 0.0 }
 0x525   :  { %1329 = vst [vmem:[#allocation8 + $0x10] sm:$0xff] %v1321_v2  ;;  %1330 = vst [vmem:[#allocation8 + $0x18] sm:$0xff] %v1322_v52 }
 0x526   :  { %1333 = vst [vmem:[#allocation8 + $0x30] sm:$0xff] %v1325_v57  ;;  %1334 = vst [vmem:[#allocation8 + $0x38] sm:$0xff] %v1326_v7 }
 0x527   :  { %1475 = shalt.err (!%p1472_p6)
}
 0x528   :  { %s1476_s1 = scalar_lea.hbm %s2620_s6, 1024 }
 0x529   :  { %p1477_p7 = scmp.ne.s32.totalorder %s2620_s6, %s1476_s1  ;;  %p1480_p8 = scmp.lt.u32.totalorder %s1476_s1, %s2620_s6 }
 0x52b   :  { %p1482_p9 = pnand %p1480_p8, %p1477_p7 }
 0x52d   :  { %1485 = shalt.err (!%p1482_p9)
}
 0x52e   :  { %1346 = dma.vmem_to_hbm [thread:$0]  %s1341_s20, 1024, %s2620_s6, [#allocation5], %s1493_s7, %s1493_s7, %s1494_s8  }
 0x52f   :  { %1490 = dma.done.wait [#allocation5], 1024  }
 0x530   :  { %1491 = vsyncadd [#allocation5], 4294966272 }
 0x531   :  { %1350 = vsyncpa [#allocation4], 1 }
 0x532   :  { %1351 = vsyncpa [#allocation7], 1 }
 0x533   :  { %1352 = vsyncpa [#allocation5], 1 }

</bundles_post_ra>
